<compile_context>
chip_gen: v6e
topology: v6e:2x2x1
jax: 0.10.0
libtpu: 0.0.40
codegen_flags: <defaults>
</compile_context>

<pallas_src>
import math
import functools

import jax
import jax.numpy as jnp
import numpy as np
from jax.experimental import pallas as pl
from jax.experimental.pallas import tpu as pltpu

EPS = 1e-5  # nn.LayerNorm default eps


def _layer_norm(x, gamma, beta):
    x = x.astype(jnp.float32)
    mu = jnp.mean(x, axis=-1, keepdims=True)
    var = jnp.mean(jnp.square(x - mu), axis=-1, keepdims=True)
    return (x - mu) * jax.lax.rsqrt(var + EPS) * gamma + beta


def cross_attention_kernel(
    q_ref, k_ref, v_ref,
    wq_ref, bq_ref, wk_ref, bk_ref, wv_ref, bv_ref,
    wo_ref, bo_ref,
    g1_ref, be1_ref,
    w1_ref, b1_ref, w2_ref, b2_ref,
    g2_ref, be2_ref,
    out_ref,
    o_scratch,                       # (Bt*Lq, E) VMEM, compute dtype: per-head concat
    *, num_heads,
):
    Bt, Lq, E = q_ref.shape
    _, Lk, _ = k_ref.shape
    D = E // num_heads
    cd = wq_ref.dtype                # MXU input dtype (bf16 by default); acc is f32.

    # Flatten the batch tile into the matmul M dimension.
    Qf32 = q_ref[...].reshape(Bt * Lq, E).astype(jnp.float32)   # kept f32 for residual
    Kf = k_ref[...].reshape(Bt * Lk, E)
    Vf = v_ref[...].reshape(Bt * Lk, E)

    # --- in-projections (weights already (in, out); attn scale folded into wq/bq) ---
    q = jnp.dot(Qf32.astype(cd), wq_ref[...], preferred_element_type=jnp.float32) + bq_ref[...]
    k = jnp.dot(Kf.astype(cd), wk_ref[...], preferred_element_type=jnp.float32) + bk_ref[...]
    v = jnp.dot(Vf.astype(cd), wv_ref[...], preferred_element_type=jnp.float32) + bv_ref[...]

    # Cast to the compute dtype ONCE; head loop slices the already-cast tensors.
    q3 = q.astype(cd).reshape(Bt, Lq, E)
    k3 = k.astype(cd).reshape(Bt, Lk, E)
    v3 = v.astype(cd).reshape(Bt, Lk, E)

    # --- per-head attention; heads written into contiguous lane slices of o_scratch ---
    for h in range(num_heads):
        sl = slice(h * D, (h + 1) * D)
        qh = q3[:, :, sl]                     # (Bt, Lq, D)
        kh = k3[:, :, sl]                     # (Bt, Lk, D)
        vh = v3[:, :, sl]                     # (Bt, Lk, D)

        s = jnp.einsum("bqd,bkd->bqk", qh, kh,
                       preferred_element_type=jnp.float32)       # (Bt, Lq, Lk)
        s = s - jnp.max(s, axis=-1, keepdims=True)
        p = jnp.exp(s)
        denom = jnp.sum(p, axis=-1, keepdims=True)
        r = pl.reciprocal(denom, approx=True)
        r = r * (2.0 - denom * r)             # one Newton step -> ~f32-exact, EUP-driven
        p = (p * r).astype(cd)

        oh = jnp.einsum("bqk,bkd->bqd", p, vh,
                        preferred_element_type=jnp.float32)       # (Bt, Lq, D)
        o_scratch[:, sl] = oh.reshape(Bt * Lq, D).astype(cd)

    # --- single K=E output projection (no per-head fold) ---
    attn = jnp.dot(o_scratch[...], wo_ref[...],
                   preferred_element_type=jnp.float32) + bo_ref[...]

    # dropout(attn) is identity in eval mode; residual uses full-precision Q.
    x = _layer_norm(attn + Qf32, g1_ref[...], be1_ref[...])

    # --- feed-forward (batch-fused; inner dropouts identity in eval mode) ---
    h1 = jnp.dot(x.astype(cd), w1_ref[...], preferred_element_type=jnp.float32) + b1_ref[...]
    h1 = jnp.maximum(h1, 0.0)
    ff = jnp.dot(h1.astype(cd), w2_ref[...], preferred_element_type=jnp.float32) + b2_ref[...]

    y = _layer_norm(x + ff, g2_ref[...], be2_ref[...])
    out_ref[...] = y.reshape(Bt, Lq, E).astype(out_ref.dtype)


def _resident_vmem_bytes(Bt, Lq, Lk, E, cd_bytes, out_bytes):
    """Approximate resident VMEM for one grid step (weights single-buffered)."""
    rows_q, rows_k = Bt * Lq, Bt * Lk
    w = 12 * E * E * cd_bytes                     # wq,wk,wv,wo (4*E^2) + w1,w2 (8*E^2)
    w += 16 * E * 4                               # biases + LN params (f32), generous
    io = 2 * rows_q * E * 4                       # Q tile (f32), double-buffered
    io += 2 * 2 * rows_k * E * cd_bytes           # K, V tiles, double-buffered
    io += 2 * rows_q * E * out_bytes              # out tile, double-buffered
    sc = rows_q * E * cd_bytes                    # per-head concat scratch
    inter = (rows_q + 2 * rows_k) * E * 4         # q/k/v projections (f32)
    inter += rows_q * 4 * E * 4                   # FFN hidden (f32)
    inter += 3 * rows_q * E * 4                   # attn / x / ff (f32)
    inter += 2 * Bt * Lq * Lk * 4                 # one head's scores + probs (f32)
    return w + io + sc + inter


def _pick_batch_block(B, Lq, Lk, E, cd_bytes, out_bytes,
                      target_rows=512, vmem_budget=48 << 20):
    """Largest Bt dividing B with Bt*Lq ~ target_rows, fitting the VMEM budget, and
    leaving >=2 grid steps (so v7x megacore can shard the 'parallel' batch axis)."""
    bt = max(1, min(B, max(1, target_rows // max(Lq, 1))))
    if B >= 2:
        bt = min(bt, B // 2)
    while bt > 1 and (B % bt != 0 or
                      _resident_vmem_bytes(bt, Lq, Lk, E, cd_bytes, out_bytes) > vmem_budget):
        bt -= 1
    return bt


def prepare_weights(params, num_heads, dtype=jnp.bfloat16):
    """One-time host-side prep: transpose to (in, out) layout, fold the 1/sqrt(D)
    attention scale into the Q projection, cast MXU weights to `dtype` (biases and
    LayerNorm params stay f32).  Call once and cache; do NOT redo per forward."""
    E = params["wq"].shape[0]
    assert E % num_heads == 0
    scale = 1.0 / math.sqrt(E // num_heads)
    return (
        (params["wq"].T * scale).astype(dtype), (params["bq"] * scale).astype(jnp.float32),
        params["wk"].T.astype(dtype),           params["bk"].astype(jnp.float32),
        params["wv"].T.astype(dtype),           params["bv"].astype(jnp.float32),
        params["wo"].T.astype(dtype),           params["bo"].astype(jnp.float32),
        params["g1"].astype(jnp.float32),       params["be1"].astype(jnp.float32),
        params["w1"].T.astype(dtype),           params["b1"].astype(jnp.float32),
        params["w2"].T.astype(dtype),           params["b2"].astype(jnp.float32),
        params["g2"].astype(jnp.float32),       params["be2"].astype(jnp.float32),
    )


def cross_attention_block(Q, K, V, weights, num_heads, *,
                          out_dtype=None, batch_block=None):
    """weights = prepare_weights(...). Q is kept in its input dtype for the residual;
    K/V and all MXU operands use the weights' compute dtype."""
    B, Lq, E = Q.shape
    _, Lk, _ = K.shape
    assert E % num_heads == 0

    cd = weights[0].dtype                         # compute dtype (bf16 by default)
    if out_dtype is None:
        out_dtype = cd
    cd_bytes = jnp.dtype(cd).itemsize
    out_bytes = jnp.dtype(out_dtype).itemsize

    if batch_block is None:
        Bt = _pick_batch_block(B, Lq, Lk, E, cd_bytes, out_bytes)
    else:
        Bt = batch_block
    assert B % Bt == 0

    # Q stays full precision (residual add); K/V are cast to the compute dtype on host.
    Kc, Vc = K.astype(cd), V.astype(cd)

    in_specs = [
        pl.BlockSpec((Bt, Lq, E), lambda b: (b, 0, 0)),
        pl.BlockSpec((Bt, Lk, E), lambda b: (b, 0, 0)),
        pl.BlockSpec((Bt, Lk, E), lambda b: (b, 0, 0)),
    ]
    # Weights: full-shape blocks, constant index_map across the grid -> single-buffer.
    for w in weights:
        in_specs.append(pl.BlockSpec(w.shape, lambda b: (0, 0),
                                     pipeline_mode=pl.Buffered(1)))

    footprint = _resident_vmem_bytes(Bt, Lq, Lk, E, cd_bytes, out_bytes)
    vmem_limit = int(min(max(32 << 20, footprint * 3 // 2 + (4 << 20)), 64 << 20))

    kernel = functools.partial(cross_attention_kernel, num_heads=num_heads)

    # NOTE: for lane-dense (unmasked) output stores in production, keep E a multiple of 128.
    return pl.pallas_call(
        kernel,
        out_shape=jax.ShapeDtypeStruct((B, Lq, E), out_dtype),
        grid_spec=pltpu.PrefetchScalarGridSpec(
            num_scalar_prefetch=0,
            grid=(B // Bt,),
            in_specs=in_specs,
            out_specs=pl.BlockSpec((Bt, Lq, E), lambda b: (b, 0, 0)),
            scratch_shapes=[pltpu.VMEM((Bt * Lq, E), cd)],
        ),
        compiler_params=pltpu.CompilerParams(
            dimension_semantics=("parallel",),
            vmem_limit_bytes=vmem_limit),
    )(Q, Kc, Vc, *weights)


def init_params(key, E):
    ks = jax.random.split(key, 12)
    s = 0.05
    p = {}
    p["wq"] = jax.random.normal(ks[0], (E, E), jnp.float32) * s
    p["wk"] = jax.random.normal(ks[1], (E, E), jnp.float32) * s
    p["wv"] = jax.random.normal(ks[2], (E, E), jnp.float32) * s
    p["bq"] = jax.random.normal(ks[3], (1, E), jnp.float32) * 0.01
    p["bk"] = jax.random.normal(ks[4], (1, E), jnp.float32) * 0.01
    p["bv"] = jax.random.normal(ks[5], (1, E), jnp.float32) * 0.01
    p["wo"] = jax.random.normal(ks[6], (E, E), jnp.float32) * s
    p["bo"] = jax.random.normal(ks[7], (1, E), jnp.float32) * 0.01
    p["g1"] = jnp.ones((1, E), jnp.float32)
    p["be1"] = jnp.zeros((1, E), jnp.float32)
    p["w1"] = jax.random.normal(ks[8], (4 * E, E), jnp.float32) * s
    p["b1"] = jax.random.normal(ks[9], (1, 4 * E), jnp.float32) * 0.01
    p["w2"] = jax.random.normal(ks[10], (E, 4 * E), jnp.float32) * s
    p["b2"] = jax.random.normal(ks[11], (1, E), jnp.float32) * 0.01
    p["g2"] = jnp.ones((1, E), jnp.float32)
    p["be2"] = jnp.zeros((1, E), jnp.float32)
    return p


def reference(Q, K, V, p, H):
    """Pure-JAX mirror of the PyTorch forward (eval mode)."""
    B, Lq, E = Q.shape
    Lk = K.shape[1]
    D = E // H
    q = Q @ p["wq"].T + p["bq"]
    k = K @ p["wk"].T + p["bk"]
    v = V @ p["wv"].T + p["bv"]
    qh = q.reshape(B, Lq, H, D)
    kh = k.reshape(B, Lk, H, D)
    vh = v.reshape(B, Lk, H, D)
    s = jnp.einsum("bqhd,bkhd->bhqk", qh, kh) / math.sqrt(D)
    attn_w = jax.nn.softmax(s, axis=-1)
    o = jnp.einsum("bhqk,bkhd->bqhd", attn_w, vh).reshape(B, Lq, E)
    attn = o @ p["wo"].T + p["bo"]

    def ln(x, g, b):
        mu = x.mean(-1, keepdims=True)
        var = ((x - mu) ** 2).mean(-1, keepdims=True)
        return (x - mu) * jax.lax.rsqrt(var + EPS) * g + b

    x = ln(attn + Q, p["g1"], p["be1"])
    ff = jnp.maximum(x @ p["w1"].T + p["b1"], 0.0) @ p["w2"].T + p["b2"]
    return ln(x + ff, p["g2"], p["be2"])


if __name__ == "__main__":
    B, Lq, Lk, E, H = 2, 8, 8, 32, 4

    key = jax.random.PRNGKey(0)
    kq, kk, kv, kp = jax.random.split(key, 4)
    Q = jax.random.normal(kq, (B, Lq, E), jnp.float32)
    K = jax.random.normal(kk, (B, Lk, E), jnp.float32)
    V = jax.random.normal(kv, (B, Lk, E), jnp.float32)
    params = init_params(kp, E)

    ref = jax.block_until_ready(reference(Q, K, V, params, H))

    # f32 compute path: tight numerical check.
    w_f32 = prepare_weights(params, num_heads=H, dtype=jnp.float32)
    out_f32 = jax.block_until_ready(
        cross_attention_block(Q, K, V, w_f32, num_heads=H, out_dtype=jnp.float32))
    np.testing.assert_allclose(np.asarray(out_f32), np.asarray(ref), rtol=1e-3, atol=1e-3)

    # bf16 compute path (default / production): loose check.
    w_bf16 = prepare_weights(params, num_heads=H)            # bf16 by default
    out_bf16 = jax.block_until_ready(
        cross_attention_block(Q, K, V, w_bf16, num_heads=H))
    np.testing.assert_allclose(np.asarray(out_bf16, dtype=np.float32), np.asarray(ref),
                               rtol=1e-1, atol=1e-1)

    print("KERNEL_OK")
</pallas_src>

<mosaic_0001>
module attributes {stable_mosaic.version = 11 : i64} {
  func.func @cross_attention_kernel(%arg0: i32, %arg1: memref<1x8x32xf32, #tpu.memory_space<vmem>>, %arg2: memref<1x8x32xf32, #tpu.memory_space<vmem>>, %arg3: memref<1x8x32xf32, #tpu.memory_space<vmem>>, %arg4: memref<32x32xf32, #tpu.memory_space<vmem>>, %arg5: memref<1x32xf32, #tpu.memory_space<vmem>>, %arg6: memref<32x32xf32, #tpu.memory_space<vmem>>, %arg7: memref<1x32xf32, #tpu.memory_space<vmem>>, %arg8: memref<32x32xf32, #tpu.memory_space<vmem>>, %arg9: memref<1x32xf32, #tpu.memory_space<vmem>>, %arg10: memref<32x32xf32, #tpu.memory_space<vmem>>, %arg11: memref<1x32xf32, #tpu.memory_space<vmem>>, %arg12: memref<1x32xf32, #tpu.memory_space<vmem>>, %arg13: memref<1x32xf32, #tpu.memory_space<vmem>>, %arg14: memref<32x128xf32, #tpu.memory_space<vmem>>, %arg15: memref<1x128xf32, #tpu.memory_space<vmem>>, %arg16: memref<128x32xf32, #tpu.memory_space<vmem>>, %arg17: memref<1x32xf32, #tpu.memory_space<vmem>>, %arg18: memref<1x32xf32, #tpu.memory_space<vmem>>, %arg19: memref<1x32xf32, #tpu.memory_space<vmem>>, %arg20: memref<1x8x32xf32, #tpu.memory_space<vmem>>, %arg21: memref<8x32xf32, #tpu.memory_space<vmem>>) attributes {dimension_semantics = [#tpu.dimension_semantics<parallel>], iteration_bounds = array<i64: 2>, scalar_prefetch = 0 : i64, scratch_operands = 1 : i64, tpu.core_type = #tpu.core_type<tc>, window_params = [{transform_indices = @transform_0, window_bounds = array<i64: 1, 8, 32>}, {transform_indices = @transform_1, window_bounds = array<i64: 1, 8, 32>}, {transform_indices = @transform_2, window_bounds = array<i64: 1, 8, 32>}, {pipeline_mode = #tpu.pipeline_mode<synchronous>, transform_indices = @transform_3, window_bounds = array<i64: 32, 32>}, {pipeline_mode = #tpu.pipeline_mode<synchronous>, transform_indices = @transform_4, window_bounds = array<i64: 1, 32>}, {pipeline_mode = #tpu.pipeline_mode<synchronous>, transform_indices = @transform_5, window_bounds = array<i64: 32, 32>}, {pipeline_mode = #tpu.pipeline_mode<synchronous>, transform_indices = @transform_6, window_bounds = array<i64: 1, 32>}, {pipeline_mode = #tpu.pipeline_mode<synchronous>, transform_indices = @transform_7, window_bounds = array<i64: 32, 32>}, {pipeline_mode = #tpu.pipeline_mode<synchronous>, transform_indices = @transform_8, window_bounds = array<i64: 1, 32>}, {pipeline_mode = #tpu.pipeline_mode<synchronous>, transform_indices = @transform_9, window_bounds = array<i64: 32, 32>}, {pipeline_mode = #tpu.pipeline_mode<synchronous>, transform_indices = @transform_10, window_bounds = array<i64: 1, 32>}, {pipeline_mode = #tpu.pipeline_mode<synchronous>, transform_indices = @transform_11, window_bounds = array<i64: 1, 32>}, {pipeline_mode = #tpu.pipeline_mode<synchronous>, transform_indices = @transform_12, window_bounds = array<i64: 1, 32>}, {pipeline_mode = #tpu.pipeline_mode<synchronous>, transform_indices = @transform_13, window_bounds = array<i64: 32, 128>}, {pipeline_mode = #tpu.pipeline_mode<synchronous>, transform_indices = @transform_14, window_bounds = array<i64: 1, 128>}, {pipeline_mode = #tpu.pipeline_mode<synchronous>, transform_indices = @transform_15, window_bounds = array<i64: 128, 32>}, {pipeline_mode = #tpu.pipeline_mode<synchronous>, transform_indices = @transform_16, window_bounds = array<i64: 1, 32>}, {pipeline_mode = #tpu.pipeline_mode<synchronous>, transform_indices = @transform_17, window_bounds = array<i64: 1, 32>}, {pipeline_mode = #tpu.pipeline_mode<synchronous>, transform_indices = @transform_18, window_bounds = array<i64: 1, 32>}, {transform_indices = @transform_19, window_bounds = array<i64: 1, 8, 32>}]} {
    %c0 = arith.constant 0 : index
    %c0_0 = arith.constant 0 : index
    %c0_1 = arith.constant 0 : index
    %0 = vector.load %arg1[%c0, %c0_0, %c0_1] : memref<1x8x32xf32, #tpu.memory_space<vmem>>, vector<1x8x32xf32>
    %1 = vector.shape_cast %0 : vector<1x8x32xf32> to vector<8x32xf32>
    %c0_2 = arith.constant 0 : index
    %c0_3 = arith.constant 0 : index
    %c0_4 = arith.constant 0 : index
    %2 = vector.load %arg2[%c0_2, %c0_3, %c0_4] : memref<1x8x32xf32, #tpu.memory_space<vmem>>, vector<1x8x32xf32>
    %3 = vector.shape_cast %2 : vector<1x8x32xf32> to vector<8x32xf32>
    %c0_5 = arith.constant 0 : index
    %c0_6 = arith.constant 0 : index
    %c0_7 = arith.constant 0 : index
    %4 = vector.load %arg3[%c0_5, %c0_6, %c0_7] : memref<1x8x32xf32, #tpu.memory_space<vmem>>, vector<1x8x32xf32>
    %5 = vector.shape_cast %4 : vector<1x8x32xf32> to vector<8x32xf32>
    %c0_8 = arith.constant 0 : index
    %c0_9 = arith.constant 0 : index
    %6 = vector.load %arg4[%c0_8, %c0_9] : memref<32x32xf32, #tpu.memory_space<vmem>>, vector<32x32xf32>
    %cst = arith.constant dense<0.000000e+00> : vector<8x32xf32>
    %7 = tpu.matmul %1, %6, %cst {dimension_numbers = #tpu.dot_dimension_numbers<[1], [0], [0], [1], [0, 0, 1, 1], [], []>} : vector<8x32xf32>, vector<32x32xf32>, vector<8x32xf32> -> vector<8x32xf32>
    %c0_10 = arith.constant 0 : index
    %c0_11 = arith.constant 0 : index
    %8 = vector.load %arg5[%c0_10, %c0_11] : memref<1x32xf32, #tpu.memory_space<vmem>>, vector<1x32xf32>
    %9 = vector.broadcast %8 : vector<1x32xf32> to vector<8x32xf32>
    %10 = arith.addf %7, %9 : vector<8x32xf32>
    %c0_12 = arith.constant 0 : index
    %c0_13 = arith.constant 0 : index
    %11 = vector.load %arg6[%c0_12, %c0_13] : memref<32x32xf32, #tpu.memory_space<vmem>>, vector<32x32xf32>
    %cst_14 = arith.constant dense<0.000000e+00> : vector<8x32xf32>
    %12 = tpu.matmul %3, %11, %cst_14 {dimension_numbers = #tpu.dot_dimension_numbers<[1], [0], [0], [1], [0, 0, 1, 1], [], []>} : vector<8x32xf32>, vector<32x32xf32>, vector<8x32xf32> -> vector<8x32xf32>
    %c0_15 = arith.constant 0 : index
    %c0_16 = arith.constant 0 : index
    %13 = vector.load %arg7[%c0_15, %c0_16] : memref<1x32xf32, #tpu.memory_space<vmem>>, vector<1x32xf32>
    %14 = vector.broadcast %13 : vector<1x32xf32> to vector<8x32xf32>
    %15 = arith.addf %12, %14 : vector<8x32xf32>
    %c0_17 = arith.constant 0 : index
    %c0_18 = arith.constant 0 : index
    %16 = vector.load %arg8[%c0_17, %c0_18] : memref<32x32xf32, #tpu.memory_space<vmem>>, vector<32x32xf32>
    %cst_19 = arith.constant dense<0.000000e+00> : vector<8x32xf32>
    %17 = tpu.matmul %5, %16, %cst_19 {dimension_numbers = #tpu.dot_dimension_numbers<[1], [0], [0], [1], [0, 0, 1, 1], [], []>} : vector<8x32xf32>, vector<32x32xf32>, vector<8x32xf32> -> vector<8x32xf32>
    %c0_20 = arith.constant 0 : index
    %c0_21 = arith.constant 0 : index
    %18 = vector.load %arg9[%c0_20, %c0_21] : memref<1x32xf32, #tpu.memory_space<vmem>>, vector<1x32xf32>
    %19 = vector.broadcast %18 : vector<1x32xf32> to vector<8x32xf32>
    %20 = arith.addf %17, %19 : vector<8x32xf32>
    %21 = vector.shape_cast %10 : vector<8x32xf32> to vector<1x8x32xf32>
    %22 = vector.shape_cast %15 : vector<8x32xf32> to vector<1x8x32xf32>
    %23 = vector.shape_cast %20 : vector<8x32xf32> to vector<1x8x32xf32>
    %24 = vector.extract_strided_slice %21 {offsets = [0, 0, 0], sizes = [1, 8, 8], strides = [1, 1, 1]} : vector<1x8x32xf32> to vector<1x8x8xf32>
    %25 = vector.extract_strided_slice %22 {offsets = [0, 0, 0], sizes = [1, 8, 8], strides = [1, 1, 1]} : vector<1x8x32xf32> to vector<1x8x8xf32>
    %26 = vector.extract_strided_slice %23 {offsets = [0, 0, 0], sizes = [1, 8, 8], strides = [1, 1, 1]} : vector<1x8x32xf32> to vector<1x8x8xf32>
    "tpu.trace_start"() <{level = 10 : i32, message = "bqd,bkd->bqk"}> : () -> ()
    %cst_22 = arith.constant dense<0.000000e+00> : vector<1x8x8xf32>
    %27 = tpu.matmul %24, %25, %cst_22 {dimension_numbers = #tpu.dot_dimension_numbers<[2], [2], [1], [1], [0, 0, 0, 1, 1, 1], [0], [0]>} : vector<1x8x8xf32>, vector<1x8x8xf32>, vector<1x8x8xf32> -> vector<1x8x8xf32>
    "tpu.trace_stop"() : () -> ()
    %cst_23 = arith.constant dense<0xFF800000> : vector<1x8xf32>
    %28 = vector.multi_reduction <maximumf>, %27, %cst_23 [2] : vector<1x8x8xf32> to vector<1x8xf32>
    %29 = vector.shape_cast %28 : vector<1x8xf32> to vector<1x8x1xf32>
    %30 = vector.broadcast %29 : vector<1x8x1xf32> to vector<1x8x8xf32>
    %31 = arith.subf %27, %30 : vector<1x8x8xf32>
    %32 = math.exp %31 : vector<1x8x8xf32>
    %cst_24 = arith.constant dense<0.000000e+00> : vector<1x8xf32>
    %33 = vector.multi_reduction <add>, %32, %cst_24 [2] : vector<1x8x8xf32> to vector<1x8xf32>
    %34 = vector.shape_cast %33 : vector<1x8xf32> to vector<1x8x1xf32>
    %35 = tpu.reciprocal %34 {approx = true} : vector<1x8x1xf32> -> vector<1x8x1xf32>
    %36 = arith.mulf %34, %35 : vector<1x8x1xf32>
    %cst_25 = arith.constant 2.000000e+00 : f32
    %37 = vector.broadcast %cst_25 : f32 to vector<1x8x1xf32>
    %38 = arith.subf %37, %36 : vector<1x8x1xf32>
    %39 = arith.mulf %35, %38 : vector<1x8x1xf32>
    %40 = vector.broadcast %39 : vector<1x8x1xf32> to vector<1x8x8xf32>
    %41 = arith.mulf %32, %40 : vector<1x8x8xf32>
    "tpu.trace_start"() <{level = 10 : i32, message = "bqk,bkd->bqd"}> : () -> ()
    %cst_26 = arith.constant dense<0.000000e+00> : vector<1x8x8xf32>
    %42 = tpu.matmul %41, %26, %cst_26 {dimension_numbers = #tpu.dot_dimension_numbers<[2], [1], [1], [2], [0, 0, 0, 1, 1, 2], [0], [0]>} : vector<1x8x8xf32>, vector<1x8x8xf32>, vector<1x8x8xf32> -> vector<1x8x8xf32>
    "tpu.trace_stop"() : () -> ()
    %43 = vector.shape_cast %42 : vector<1x8x8xf32> to vector<8x8xf32>
    %c0_27 = arith.constant 0 : index
    %c0_28 = arith.constant 0 : index
    %44 = vector.load %arg21[%c0_27, %c0_28] : memref<8x32xf32, #tpu.memory_space<vmem>>, vector<8x8xf32>
    tpu.vector_store %arg21[%c0_27, %c0_28], %43 {strides = array<i32>} : memref<8x32xf32, #tpu.memory_space<vmem>>, vector<8x8xf32>,
    %45 = vector.extract_strided_slice %21 {offsets = [0, 0, 8], sizes = [1, 8, 8], strides = [1, 1, 1]} : vector<1x8x32xf32> to vector<1x8x8xf32>
    %46 = vector.extract_strided_slice %22 {offsets = [0, 0, 8], sizes = [1, 8, 8], strides = [1, 1, 1]} : vector<1x8x32xf32> to vector<1x8x8xf32>
    %47 = vector.extract_strided_slice %23 {offsets = [0, 0, 8], sizes = [1, 8, 8], strides = [1, 1, 1]} : vector<1x8x32xf32> to vector<1x8x8xf32>
    "tpu.trace_start"() <{level = 10 : i32, message = "bqd,bkd->bqk"}> : () -> ()
    %cst_29 = arith.constant dense<0.000000e+00> : vector<1x8x8xf32>
    %48 = tpu.matmul %45, %46, %cst_29 {dimension_numbers = #tpu.dot_dimension_numbers<[2], [2], [1], [1], [0, 0, 0, 1, 1, 1], [0], [0]>} : vector<1x8x8xf32>, vector<1x8x8xf32>, vector<1x8x8xf32> -> vector<1x8x8xf32>
    "tpu.trace_stop"() : () -> ()
    %cst_30 = arith.constant dense<0xFF800000> : vector<1x8xf32>
    %49 = vector.multi_reduction <maximumf>, %48, %cst_30 [2] : vector<1x8x8xf32> to vector<1x8xf32>
    %50 = vector.shape_cast %49 : vector<1x8xf32> to vector<1x8x1xf32>
    %51 = vector.broadcast %50 : vector<1x8x1xf32> to vector<1x8x8xf32>
    %52 = arith.subf %48, %51 : vector<1x8x8xf32>
    %53 = math.exp %52 : vector<1x8x8xf32>
    %cst_31 = arith.constant dense<0.000000e+00> : vector<1x8xf32>
    %54 = vector.multi_reduction <add>, %53, %cst_31 [2] : vector<1x8x8xf32> to vector<1x8xf32>
    %55 = vector.shape_cast %54 : vector<1x8xf32> to vector<1x8x1xf32>
    %56 = tpu.reciprocal %55 {approx = true} : vector<1x8x1xf32> -> vector<1x8x1xf32>
    %57 = arith.mulf %55, %56 : vector<1x8x1xf32>
    %cst_32 = arith.constant 2.000000e+00 : f32
    %58 = vector.broadcast %cst_32 : f32 to vector<1x8x1xf32>
    %59 = arith.subf %58, %57 : vector<1x8x1xf32>
    %60 = arith.mulf %56, %59 : vector<1x8x1xf32>
    %61 = vector.broadcast %60 : vector<1x8x1xf32> to vector<1x8x8xf32>
    %62 = arith.mulf %53, %61 : vector<1x8x8xf32>
    "tpu.trace_start"() <{level = 10 : i32, message = "bqk,bkd->bqd"}> : () -> ()
    %cst_33 = arith.constant dense<0.000000e+00> : vector<1x8x8xf32>
    %63 = tpu.matmul %62, %47, %cst_33 {dimension_numbers = #tpu.dot_dimension_numbers<[2], [1], [1], [2], [0, 0, 0, 1, 1, 2], [0], [0]>} : vector<1x8x8xf32>, vector<1x8x8xf32>, vector<1x8x8xf32> -> vector<1x8x8xf32>
    "tpu.trace_stop"() : () -> ()
    %64 = vector.shape_cast %63 : vector<1x8x8xf32> to vector<8x8xf32>
    %c0_34 = arith.constant 0 : index
    %c8 = arith.constant 8 : index
    %65 = vector.load %arg21[%c0_34, %c8] : memref<8x32xf32, #tpu.memory_space<vmem>>, vector<8x8xf32>
    tpu.vector_store %arg21[%c0_34, %c8], %64 {strides = array<i32>} : memref<8x32xf32, #tpu.memory_space<vmem>>, vector<8x8xf32>,
    %66 = vector.extract_strided_slice %21 {offsets = [0, 0, 16], sizes = [1, 8, 8], strides = [1, 1, 1]} : vector<1x8x32xf32> to vector<1x8x8xf32>
    %67 = vector.extract_strided_slice %22 {offsets = [0, 0, 16], sizes = [1, 8, 8], strides = [1, 1, 1]} : vector<1x8x32xf32> to vector<1x8x8xf32>
    %68 = vector.extract_strided_slice %23 {offsets = [0, 0, 16], sizes = [1, 8, 8], strides = [1, 1, 1]} : vector<1x8x32xf32> to vector<1x8x8xf32>
    "tpu.trace_start"() <{level = 10 : i32, message = "bqd,bkd->bqk"}> : () -> ()
    %cst_35 = arith.constant dense<0.000000e+00> : vector<1x8x8xf32>
    %69 = tpu.matmul %66, %67, %cst_35 {dimension_numbers = #tpu.dot_dimension_numbers<[2], [2], [1], [1], [0, 0, 0, 1, 1, 1], [0], [0]>} : vector<1x8x8xf32>, vector<1x8x8xf32>, vector<1x8x8xf32> -> vector<1x8x8xf32>
    "tpu.trace_stop"() : () -> ()
    %cst_36 = arith.constant dense<0xFF800000> : vector<1x8xf32>
    %70 = vector.multi_reduction <maximumf>, %69, %cst_36 [2] : vector<1x8x8xf32> to vector<1x8xf32>
    %71 = vector.shape_cast %70 : vector<1x8xf32> to vector<1x8x1xf32>
    %72 = vector.broadcast %71 : vector<1x8x1xf32> to vector<1x8x8xf32>
    %73 = arith.subf %69, %72 : vector<1x8x8xf32>
    %74 = math.exp %73 : vector<1x8x8xf32>
    %cst_37 = arith.constant dense<0.000000e+00> : vector<1x8xf32>
    %75 = vector.multi_reduction <add>, %74, %cst_37 [2] : vector<1x8x8xf32> to vector<1x8xf32>
    %76 = vector.shape_cast %75 : vector<1x8xf32> to vector<1x8x1xf32>
    %77 = tpu.reciprocal %76 {approx = true} : vector<1x8x1xf32> -> vector<1x8x1xf32>
    %78 = arith.mulf %76, %77 : vector<1x8x1xf32>
    %cst_38 = arith.constant 2.000000e+00 : f32
    %79 = vector.broadcast %cst_38 : f32 to vector<1x8x1xf32>
    %80 = arith.subf %79, %78 : vector<1x8x1xf32>
    %81 = arith.mulf %77, %80 : vector<1x8x1xf32>
    %82 = vector.broadcast %81 : vector<1x8x1xf32> to vector<1x8x8xf32>
    %83 = arith.mulf %74, %82 : vector<1x8x8xf32>
    "tpu.trace_start"() <{level = 10 : i32, message = "bqk,bkd->bqd"}> : () -> ()
    %cst_39 = arith.constant dense<0.000000e+00> : vector<1x8x8xf32>
    %84 = tpu.matmul %83, %68, %cst_39 {dimension_numbers = #tpu.dot_dimension_numbers<[2], [1], [1], [2], [0, 0, 0, 1, 1, 2], [0], [0]>} : vector<1x8x8xf32>, vector<1x8x8xf32>, vector<1x8x8xf32> -> vector<1x8x8xf32>
    "tpu.trace_stop"() : () -> ()
    %85 = vector.shape_cast %84 : vector<1x8x8xf32> to vector<8x8xf32>
    %c0_40 = arith.constant 0 : index
    %c16 = arith.constant 16 : index
    %86 = vector.load %arg21[%c0_40, %c16] : memref<8x32xf32, #tpu.memory_space<vmem>>, vector<8x8xf32>
    tpu.vector_store %arg21[%c0_40, %c16], %85 {strides = array<i32>} : memref<8x32xf32, #tpu.memory_space<vmem>>, vector<8x8xf32>,
    %87 = vector.extract_strided_slice %21 {offsets = [0, 0, 24], sizes = [1, 8, 8], strides = [1, 1, 1]} : vector<1x8x32xf32> to vector<1x8x8xf32>
    %88 = vector.extract_strided_slice %22 {offsets = [0, 0, 24], sizes = [1, 8, 8], strides = [1, 1, 1]} : vector<1x8x32xf32> to vector<1x8x8xf32>
    %89 = vector.extract_strided_slice %23 {offsets = [0, 0, 24], sizes = [1, 8, 8], strides = [1, 1, 1]} : vector<1x8x32xf32> to vector<1x8x8xf32>
    "tpu.trace_start"() <{level = 10 : i32, message = "bqd,bkd->bqk"}> : () -> ()
    %cst_41 = arith.constant dense<0.000000e+00> : vector<1x8x8xf32>
    %90 = tpu.matmul %87, %88, %cst_41 {dimension_numbers = #tpu.dot_dimension_numbers<[2], [2], [1], [1], [0, 0, 0, 1, 1, 1], [0], [0]>} : vector<1x8x8xf32>, vector<1x8x8xf32>, vector<1x8x8xf32> -> vector<1x8x8xf32>
    "tpu.trace_stop"() : () -> ()
    %cst_42 = arith.constant dense<0xFF800000> : vector<1x8xf32>
    %91 = vector.multi_reduction <maximumf>, %90, %cst_42 [2] : vector<1x8x8xf32> to vector<1x8xf32>
    %92 = vector.shape_cast %91 : vector<1x8xf32> to vector<1x8x1xf32>
    %93 = vector.broadcast %92 : vector<1x8x1xf32> to vector<1x8x8xf32>
    %94 = arith.subf %90, %93 : vector<1x8x8xf32>
    %95 = math.exp %94 : vector<1x8x8xf32>
    %cst_43 = arith.constant dense<0.000000e+00> : vector<1x8xf32>
    %96 = vector.multi_reduction <add>, %95, %cst_43 [2] : vector<1x8x8xf32> to vector<1x8xf32>
    %97 = vector.shape_cast %96 : vector<1x8xf32> to vector<1x8x1xf32>
    %98 = tpu.reciprocal %97 {approx = true} : vector<1x8x1xf32> -> vector<1x8x1xf32>
    %99 = arith.mulf %97, %98 : vector<1x8x1xf32>
    %cst_44 = arith.constant 2.000000e+00 : f32
    %100 = vector.broadcast %cst_44 : f32 to vector<1x8x1xf32>
    %101 = arith.subf %100, %99 : vector<1x8x1xf32>
    %102 = arith.mulf %98, %101 : vector<1x8x1xf32>
    %103 = vector.broadcast %102 : vector<1x8x1xf32> to vector<1x8x8xf32>
    %104 = arith.mulf %95, %103 : vector<1x8x8xf32>
    "tpu.trace_start"() <{level = 10 : i32, message = "bqk,bkd->bqd"}> : () -> ()
    %cst_45 = arith.constant dense<0.000000e+00> : vector<1x8x8xf32>
    %105 = tpu.matmul %104, %89, %cst_45 {dimension_numbers = #tpu.dot_dimension_numbers<[2], [1], [1], [2], [0, 0, 0, 1, 1, 2], [0], [0]>} : vector<1x8x8xf32>, vector<1x8x8xf32>, vector<1x8x8xf32> -> vector<1x8x8xf32>
    "tpu.trace_stop"() : () -> ()
    %106 = vector.shape_cast %105 : vector<1x8x8xf32> to vector<8x8xf32>
    %c0_46 = arith.constant 0 : index
    %c24 = arith.constant 24 : index
    %107 = vector.load %arg21[%c0_46, %c24] : memref<8x32xf32, #tpu.memory_space<vmem>>, vector<8x8xf32>
    tpu.vector_store %arg21[%c0_46, %c24], %106 {strides = array<i32>} : memref<8x32xf32, #tpu.memory_space<vmem>>, vector<8x8xf32>,
    %c0_47 = arith.constant 0 : index
    %c0_48 = arith.constant 0 : index
    %108 = vector.load %arg21[%c0_47, %c0_48] : memref<8x32xf32, #tpu.memory_space<vmem>>, vector<8x32xf32>
    %c0_49 = arith.constant 0 : index
    %c0_50 = arith.constant 0 : index
    %109 = vector.load %arg10[%c0_49, %c0_50] : memref<32x32xf32, #tpu.memory_space<vmem>>, vector<32x32xf32>
    %cst_51 = arith.constant dense<0.000000e+00> : vector<8x32xf32>
    %110 = tpu.matmul %108, %109, %cst_51 {dimension_numbers = #tpu.dot_dimension_numbers<[1], [0], [0], [1], [0, 0, 1, 1], [], []>} : vector<8x32xf32>, vector<32x32xf32>, vector<8x32xf32> -> vector<8x32xf32>
    %c0_52 = arith.constant 0 : index
    %c0_53 = arith.constant 0 : index
    %111 = vector.load %arg11[%c0_52, %c0_53] : memref<1x32xf32, #tpu.memory_space<vmem>>, vector<1x32xf32>
    %112 = vector.broadcast %111 : vector<1x32xf32> to vector<8x32xf32>
    %113 = arith.addf %110, %112 : vector<8x32xf32>
    %114 = arith.addf %113, %1 : vector<8x32xf32>
    %c0_54 = arith.constant 0 : index
    %c0_55 = arith.constant 0 : index
    %115 = vector.load %arg12[%c0_54, %c0_55] : memref<1x32xf32, #tpu.memory_space<vmem>>, vector<1x32xf32>
    %c0_56 = arith.constant 0 : index
    %c0_57 = arith.constant 0 : index
    %116 = vector.load %arg13[%c0_56, %c0_57] : memref<1x32xf32, #tpu.memory_space<vmem>>, vector<1x32xf32>
    %cst_58 = arith.constant dense<0.000000e+00> : vector<8xf32>
    %117 = vector.multi_reduction <add>, %114, %cst_58 [1] : vector<8x32xf32> to vector<8xf32>
    %118 = vector.shape_cast %117 : vector<8xf32> to vector<8x1xf32>
    %cst_59 = arith.constant 3.200000e+01 : f32
    %119 = vector.broadcast %cst_59 : f32 to vector<8x1xf32>
    %120 = arith.divf %118, %119 : vector<8x1xf32>
    %121 = vector.broadcast %120 : vector<8x1xf32> to vector<8x32xf32>
    %122 = arith.subf %114, %121 : vector<8x32xf32>
    %123 = arith.mulf %122, %122 : vector<8x32xf32>
    %cst_60 = arith.constant dense<0.000000e+00> : vector<8xf32>
    %124 = vector.multi_reduction <add>, %123, %cst_60 [1] : vector<8x32xf32> to vector<8xf32>
    %125 = vector.shape_cast %124 : vector<8xf32> to vector<8x1xf32>
    %cst_61 = arith.constant 3.200000e+01 : f32
    %126 = vector.broadcast %cst_61 : f32 to vector<8x1xf32>
    %127 = arith.divf %125, %126 : vector<8x1xf32>
    %128 = vector.broadcast %120 : vector<8x1xf32> to vector<8x32xf32>
    %129 = arith.subf %114, %128 : vector<8x32xf32>
    %cst_62 = arith.constant 9.99999974E-6 : f32
    %130 = vector.broadcast %cst_62 : f32 to vector<8x1xf32>
    %131 = arith.addf %127, %130 : vector<8x1xf32>
    %132 = math.rsqrt %131 : vector<8x1xf32>
    %133 = vector.broadcast %132 : vector<8x1xf32> to vector<8x32xf32>
    %134 = arith.mulf %129, %133 : vector<8x32xf32>
    %135 = vector.broadcast %115 : vector<1x32xf32> to vector<8x32xf32>
    %136 = arith.mulf %134, %135 : vector<8x32xf32>
    %137 = vector.broadcast %116 : vector<1x32xf32> to vector<8x32xf32>
    %138 = arith.addf %136, %137 : vector<8x32xf32>
    %c0_63 = arith.constant 0 : index
    %c0_64 = arith.constant 0 : index
    %139 = vector.load %arg14[%c0_63, %c0_64] : memref<32x128xf32, #tpu.memory_space<vmem>>, vector<32x128xf32>
    %cst_65 = arith.constant dense<0.000000e+00> : vector<8x128xf32>
    %140 = tpu.matmul %138, %139, %cst_65 {dimension_numbers = #tpu.dot_dimension_numbers<[1], [0], [0], [1], [0, 0, 1, 1], [], []>} : vector<8x32xf32>, vector<32x128xf32>, vector<8x128xf32> -> vector<8x128xf32>
    %c0_66 = arith.constant 0 : index
    %c0_67 = arith.constant 0 : index
    %141 = vector.load %arg15[%c0_66, %c0_67] : memref<1x128xf32, #tpu.memory_space<vmem>>, vector<1x128xf32>
    %142 = vector.broadcast %141 : vector<1x128xf32> to vector<8x128xf32>
    %143 = arith.addf %140, %142 : vector<8x128xf32>
    %cst_68 = arith.constant 0.000000e+00 : f32
    %144 = vector.broadcast %cst_68 : f32 to vector<8x128xf32>
    %145 = arith.maximumf %143, %144 : vector<8x128xf32>
    %c0_69 = arith.constant 0 : index
    %c0_70 = arith.constant 0 : index
    %146 = vector.load %arg16[%c0_69, %c0_70] : memref<128x32xf32, #tpu.memory_space<vmem>>, vector<128x32xf32>
    %cst_71 = arith.constant dense<0.000000e+00> : vector<8x32xf32>
    %147 = tpu.matmul %145, %146, %cst_71 {dimension_numbers = #tpu.dot_dimension_numbers<[1], [0], [0], [1], [0, 0, 1, 1], [], []>} : vector<8x128xf32>, vector<128x32xf32>, vector<8x32xf32> -> vector<8x32xf32>
    %c0_72 = arith.constant 0 : index
    %c0_73 = arith.constant 0 : index
    %148 = vector.load %arg17[%c0_72, %c0_73] : memref<1x32xf32, #tpu.memory_space<vmem>>, vector<1x32xf32>
    %149 = vector.broadcast %148 : vector<1x32xf32> to vector<8x32xf32>
    %150 = arith.addf %147, %149 : vector<8x32xf32>
    %151 = arith.addf %138, %150 : vector<8x32xf32>
    %c0_74 = arith.constant 0 : index
    %c0_75 = arith.constant 0 : index
    %152 = vector.load %arg18[%c0_74, %c0_75] : memref<1x32xf32, #tpu.memory_space<vmem>>, vector<1x32xf32>
    %c0_76 = arith.constant 0 : index
    %c0_77 = arith.constant 0 : index
    %153 = vector.load %arg19[%c0_76, %c0_77] : memref<1x32xf32, #tpu.memory_space<vmem>>, vector<1x32xf32>
    %cst_78 = arith.constant dense<0.000000e+00> : vector<8xf32>
    %154 = vector.multi_reduction <add>, %151, %cst_78 [1] : vector<8x32xf32> to vector<8xf32>
    %155 = vector.shape_cast %154 : vector<8xf32> to vector<8x1xf32>
    %cst_79 = arith.constant 3.200000e+01 : f32
    %156 = vector.broadcast %cst_79 : f32 to vector<8x1xf32>
    %157 = arith.divf %155, %156 : vector<8x1xf32>
    %158 = vector.broadcast %157 : vector<8x1xf32> to vector<8x32xf32>
    %159 = arith.subf %151, %158 : vector<8x32xf32>
    %160 = arith.mulf %159, %159 : vector<8x32xf32>
    %cst_80 = arith.constant dense<0.000000e+00> : vector<8xf32>
    %161 = vector.multi_reduction <add>, %160, %cst_80 [1] : vector<8x32xf32> to vector<8xf32>
    %162 = vector.shape_cast %161 : vector<8xf32> to vector<8x1xf32>
    %cst_81 = arith.constant 3.200000e+01 : f32
    %163 = vector.broadcast %cst_81 : f32 to vector<8x1xf32>
    %164 = arith.divf %162, %163 : vector<8x1xf32>
    %165 = vector.broadcast %157 : vector<8x1xf32> to vector<8x32xf32>
    %166 = arith.subf %151, %165 : vector<8x32xf32>
    %cst_82 = arith.constant 9.99999974E-6 : f32
    %167 = vector.broadcast %cst_82 : f32 to vector<8x1xf32>
    %168 = arith.addf %164, %167 : vector<8x1xf32>
    %169 = math.rsqrt %168 : vector<8x1xf32>
    %170 = vector.broadcast %169 : vector<8x1xf32> to vector<8x32xf32>
    %171 = arith.mulf %166, %170 : vector<8x32xf32>
    %172 = vector.broadcast %152 : vector<1x32xf32> to vector<8x32xf32>
    %173 = arith.mulf %171, %172 : vector<8x32xf32>
    %174 = vector.broadcast %153 : vector<1x32xf32> to vector<8x32xf32>
    %175 = arith.addf %173, %174 : vector<8x32xf32>
    %176 = vector.shape_cast %175 : vector<8x32xf32> to vector<1x8x32xf32>
    %c0_83 = arith.constant 0 : index
    %c0_84 = arith.constant 0 : index
    %c0_85 = arith.constant 0 : index
    %177 = vector.load %arg20[%c0_83, %c0_84, %c0_85] : memref<1x8x32xf32, #tpu.memory_space<vmem>>, vector<1x8x32xf32>
    tpu.vector_store %arg20[%c0_83, %c0_84, %c0_85], %176 {strides = array<i32>} : memref<1x8x32xf32, #tpu.memory_space<vmem>>, vector<1x8x32xf32>,
    return
  }
  func.func @transform_0(%arg0: i32) -> (i32, i32, i32) {
    %c0_i32 = arith.constant 0 : i32
    %c0_i32_0 = arith.constant 0 : i32
    %c0_i32_1 = arith.constant 0 : i32
    return %arg0, %c0_i32, %c0_i32_0 : i32, i32, i32
  }
  func.func @transform_1(%arg0: i32) -> (i32, i32, i32) {
    %c0_i32 = arith.constant 0 : i32
    %c0_i32_0 = arith.constant 0 : i32
    %c0_i32_1 = arith.constant 0 : i32
    return %arg0, %c0_i32, %c0_i32_0 : i32, i32, i32
  }
  func.func @transform_2(%arg0: i32) -> (i32, i32, i32) {
    %c0_i32 = arith.constant 0 : i32
    %c0_i32_0 = arith.constant 0 : i32
    %c0_i32_1 = arith.constant 0 : i32
    return %arg0, %c0_i32, %c0_i32_0 : i32, i32, i32
  }
  func.func @transform_3(%arg0: i32) -> (i32, i32) {
    %c0_i32 = arith.constant 0 : i32
    %c0_i32_0 = arith.constant 0 : i32
    %c0_i32_1 = arith.constant 0 : i32
    return %c0_i32, %c0_i32_0 : i32, i32
  }
  func.func @transform_4(%arg0: i32) -> (i32, i32) {
    %c0_i32 = arith.constant 0 : i32
    %c0_i32_0 = arith.constant 0 : i32
    %c0_i32_1 = arith.constant 0 : i32
    return %c0_i32, %c0_i32_0 : i32, i32
  }
  func.func @transform_5(%arg0: i32) -> (i32, i32) {
    %c0_i32 = arith.constant 0 : i32
    %c0_i32_0 = arith.constant 0 : i32
    %c0_i32_1 = arith.constant 0 : i32
    return %c0_i32, %c0_i32_0 : i32, i32
  }
  func.func @transform_6(%arg0: i32) -> (i32, i32) {
    %c0_i32 = arith.constant 0 : i32
    %c0_i32_0 = arith.constant 0 : i32
    %c0_i32_1 = arith.constant 0 : i32
    return %c0_i32, %c0_i32_0 : i32, i32
  }
  func.func @transform_7(%arg0: i32) -> (i32, i32) {
    %c0_i32 = arith.constant 0 : i32
    %c0_i32_0 = arith.constant 0 : i32
    %c0_i32_1 = arith.constant 0 : i32
    return %c0_i32, %c0_i32_0 : i32, i32
  }
  func.func @transform_8(%arg0: i32) -> (i32, i32) {
    %c0_i32 = arith.constant 0 : i32
    %c0_i32_0 = arith.constant 0 : i32
    %c0_i32_1 = arith.constant 0 : i32
    return %c0_i32, %c0_i32_0 : i32, i32
  }
  func.func @transform_9(%arg0: i32) -> (i32, i32) {
    %c0_i32 = arith.constant 0 : i32
    %c0_i32_0 = arith.constant 0 : i32
    %c0_i32_1 = arith.constant 0 : i32
    return %c0_i32, %c0_i32_0 : i32, i32
  }
  func.func @transform_10(%arg0: i32) -> (i32, i32) {
    %c0_i32 = arith.constant 0 : i32
    %c0_i32_0 = arith.constant 0 : i32
    %c0_i32_1 = arith.constant 0 : i32
    return %c0_i32, %c0_i32_0 : i32, i32
  }
  func.func @transform_11(%arg0: i32) -> (i32, i32) {
    %c0_i32 = arith.constant 0 : i32
    %c0_i32_0 = arith.constant 0 : i32
    %c0_i32_1 = arith.constant 0 : i32
    return %c0_i32, %c0_i32_0 : i32, i32
  }
  func.func @transform_12(%arg0: i32) -> (i32, i32) {
    %c0_i32 = arith.constant 0 : i32
    %c0_i32_0 = arith.constant 0 : i32
    %c0_i32_1 = arith.constant 0 : i32
    return %c0_i32, %c0_i32_0 : i32, i32
  }
  func.func @transform_13(%arg0: i32) -> (i32, i32) {
    %c0_i32 = arith.constant 0 : i32
    %c0_i32_0 = arith.constant 0 : i32
    %c0_i32_1 = arith.constant 0 : i32
    return %c0_i32, %c0_i32_0 : i32, i32
  }
  func.func @transform_14(%arg0: i32) -> (i32, i32) {
    %c0_i32 = arith.constant 0 : i32
    %c0_i32_0 = arith.constant 0 : i32
    %c0_i32_1 = arith.constant 0 : i32
    return %c0_i32, %c0_i32_0 : i32, i32
  }
  func.func @transform_15(%arg0: i32) -> (i32, i32) {
    %c0_i32 = arith.constant 0 : i32
    %c0_i32_0 = arith.constant 0 : i32
    %c0_i32_1 = arith.constant 0 : i32
    return %c0_i32, %c0_i32_0 : i32, i32
  }
  func.func @transform_16(%arg0: i32) -> (i32, i32) {
    %c0_i32 = arith.constant 0 : i32
    %c0_i32_0 = arith.constant 0 : i32
    %c0_i32_1 = arith.constant 0 : i32
    return %c0_i32, %c0_i32_0 : i32, i32
  }
  func.func @transform_17(%arg0: i32) -> (i32, i32) {
    %c0_i32 = arith.constant 0 : i32
    %c0_i32_0 = arith.constant 0 : i32
    %c0_i32_1 = arith.constant 0 : i32
    return %c0_i32, %c0_i32_0 : i32, i32
  }
  func.func @transform_18(%arg0: i32) -> (i32, i32) {
    %c0_i32 = arith.constant 0 : i32
    %c0_i32_0 = arith.constant 0 : i32
    %c0_i32_1 = arith.constant 0 : i32
    return %c0_i32, %c0_i32_0 : i32, i32
  }
  func.func @transform_19(%arg0: i32) -> (i32, i32, i32) {
    %c0_i32 = arith.constant 0 : i32
    %c0_i32_0 = arith.constant 0 : i32
    %c0_i32_1 = arith.constant 0 : i32
    return %arg0, %c0_i32, %c0_i32_0 : i32, i32, i32
  }
}

</mosaic_0001>

<bundles_post_ra>
// kernel: tpu_custom_call.1
= control target key start
LH: loop header
LB: loop body
LE: loop exit
PB: predicated region body
PF: predicated region fallthrough
CT: control target
= control target key end

     0   :  { %s3137_s0 = inlined_call_operand.hbm [shape: f32[2,8,32], index: 0, kind: input, shape index: {}]   ;;  %s3138_s1 = inlined_call_operand.hbm [shape: f32[2,8,32], index: 1, kind: input, shape index: {}]   ;;  %s3139_s2 = inlined_call_operand.hbm [shape: f32[2,8,32], index: 2, kind: input, shape index: {}]   ;;  %s3140_s3 = inlined_call_operand.vmem [shape: f32[32,32], index: 3, kind: input, shape index: {}]   ;;  %s3141_s4 = inlined_call_operand.vmem [shape: f32[1,32], index: 4, kind: input, shape index: {}]   ;;  %s3142_s5 = inlined_call_operand.vmem [shape: f32[32,32], index: 5, kind: input, shape index: {}]   ;;  %s3143_s6 = inlined_call_operand.vmem [shape: f32[1,32], index: 6, kind: input, shape index: {}]   ;;  %s3144_s7 = inlined_call_operand.vmem [shape: f32[32,32], index: 7, kind: input, shape index: {}]   ;;  %s3145_s8 = inlined_call_operand.vmem [shape: f32[1,32], index: 8, kind: input, shape index: {}]   ;;  %s3146_s9 = inlined_call_operand.vmem [shape: f32[32,32], index: 9, kind: input, shape index: {}]   ;;  %s3147_s10 = inlined_call_operand.vmem [shape: f32[1,32], index: 10, kind: input, shape index: {}]   ;;  %s3148_s11 = inlined_call_operand.vmem [shape: f32[1,32], index: 11, kind: input, shape index: {}]   ;;  %s3149_s12 = inlined_call_operand.vmem [shape: f32[1,32], index: 12, kind: input, shape index: {}]   ;;  %s3150_s13 = inlined_call_operand.vmem [shape: f32[32,128], index: 13, kind: input, shape index: {}]   ;;  %s3151_s14 = inlined_call_operand.vmem [shape: f32[1,128], index: 14, kind: input, shape index: {}]   ;;  %s3152_s15 = inlined_call_operand.vmem [shape: f32[128,32], index: 15, kind: input, shape index: {}]   ;;  %s3153_s16 = inlined_call_operand.vmem [shape: f32[1,32], index: 16, kind: input, shape index: {}]   ;;  %s3154_s17 = inlined_call_operand.vmem [shape: f32[1,32], index: 17, kind: input, shape index: {}]   ;;  %s3155_s18 = inlined_call_operand.vmem [shape: f32[1,32], index: 18, kind: input, shape index: {}]   ;;  %s3156_s19 = inlined_call_operand.hbm [shape: f32[2,8,32], index: 19, kind: output, shape index: {}]  }
   0x1   :  { %3177 = sst [smem:[#allocation20_spill]] %s3137_s0 }
   0x2   :  { %3178 = sst [smem:[#allocation21_spill]] %s3138_s1 }
   0x3   :  { %3179 = sst [smem:[#allocation22_spill]] %s3139_s2 }
   0x4   :  { %3180 = sst [smem:[#allocation23_spill]] %s3140_s3 }
   0x5   :  { %3181 = sst [smem:[#allocation24_spill]] %s3148_s11 }
   0x6   :  { %3182 = sst [smem:[#allocation25_spill]] %s3149_s12 }
   0x7   :  { %3183 = sst [smem:[#allocation26_spill]] %s3150_s13 }
   0x8   :  { %3184 = sst [smem:[#allocation27_spill]] %s3151_s14 }
   0x9   :  { %3185 = sst [smem:[#allocation28_spill]] %s3152_s15 }
   0xa   :  { %3186 = sst [smem:[#allocation29_spill]] %s3153_s16 }
   0xb   :  { %3187 = sst [smem:[#allocation30_spill]] %s3154_s17 }
   0xc   :  { %3188 = sst [smem:[#allocation31_spill]] %s3155_s18 }
   0xd   :  { %3189 = sst [smem:[#allocation32_spill]] %s3156_s19 }
   0xe   :  { %24 = vsyncpa [#allocation4], 0 }
   0xf   :  { %26 = vsyncpa [#allocation4 + $0x1], 0 }
  0x10   :  { %27 = vsyncpa [#allocation7], 0 }
  0x11   :  { %29 = vsyncpa [#allocation7 + $0x1], 0 }
  0x12   :  { %30 = vsyncpa [#allocation5], 0 }
  0x13   :  { %32 = vsyncpa [#allocation5 + $0x1], 0  ;;  %s2668_s0 = smov 0   ;;  %s2670_s30 = smov 0  }
  0x14   :  { %s2672_s20 = smov 0   ;;  %s2674_s21 = smov 0  }
  0x15 LB: > { %3190 = sst [smem:[#allocation13_spill]] %s2542_s0  ;;  %s2689_s1 = sadd.s32 4294967295, %s2554_s21   ;;  %s2554_s21 = sphi %s2674_s21, %s3228_s21   ;;  %s2550_s20 = sphi %s2672_s20, %s3230_s20   ;;  %s2546_s30 = sphi %s2670_s30, %s3232_s30   ;;  %s2542_s0 = sphi %s2668_s0, %s3231_s0  }
  0x16   : > { %3191 = sst [smem:[#allocation14_spill]] %s2550_s20  ;;  %s2085_s22 = sadd.s32 4294967294, %s2554_s21  }
  0x17   : > { %3192 = sst [smem:[#allocation15_spill]] %s2554_s21  ;;  %s2693_s2 = sadd.s32 1, %s2554_s21  }
  0x18   : > { %3193 = sst [smem:[#allocation16_spill]] %s2693_s2  ;;  %s45_s23 = sadd.s32 1, %s2550_s20 }
  0x19   : > { %s42_s24 = ssub.s32 %s2554_s21, %s2693_s2  ;;  %p52_p0 = scmp.ne.s32.totalorder %s2550_s20, %s2546_s30 }
  0x1a   : > { %p43_p1 = scmp.eq.s32.totalorder %s42_s24, 0  ;;  %p53_p2 = scmp.eq.s32.totalorder %s2554_s21, 0 }
  0x1b   : > { %p58_p3 = scmp.ne.s32.totalorder %s2546_s30, %s2542_s0  ;;  %p59_p4 = scmp.eq.s32.totalorder %s2689_s1, 0 }
  0x1c   : > { %s2705_s25 = scalar_select %p43_p1, %s2550_s20, %s45_s23  }
  0x1d   : > { %p54_p5 = por %p53_p2, %p52_p0  ;;  %p2707_p6 = por %p59_p4, %p58_p3 }
  0x1e   : > { %3194 = sst [smem:[#allocation17_spill]] %s2705_s25  ;;  %p470_p7 = scmp.eq.s32.totalorder %s2689_s1, 1 }
  0x1f   : > { %s3195_s3 = scalar_select %p2707_p6, 1, 0 }
  0x20   : > { %p476_p8 = scmp.eq.s32.totalorder %s2085_s22, 1  ;;  %p2340_p10 = scmp.lt.s32.totalorder %s2554_s21, 2 }
  0x21   : > { %p2714_p11 = por %p470_p7, %p52_p0  ;;  %s3166_s28 = sand.u32 1, %s2550_s20  }
  0x22   : > { %p2718_p12 = por %p476_p8, %p58_p3  ;;  %s2724_s29 = sshll.u32 %s2554_s21, 7 }
  0x23   : > { %s3196_s26 = scalar_select %p2714_p11, 1, 0 }
  0x24   : > { %s3198_s27 = scalar_select %p2718_p12, 1, 0 }
  0x25   : > { %3197 = sst [smem:[#allocation18_spill]] %s3196_s26  ;;  %s2728_s23 = sshll.u32 %s3166_s28, 3 }
  0x26   : > { %3199 = sst [smem:[#allocation19_spill]] %s3198_s27  ;;  %p2730_p13 = pnand %p2340_p10, %p54_p5 }
  0x27   : > { %s562_s24 = sand.u32 1, %s2554_s21   ;;  %s3201_s0 = sld [smem:[#allocation21_spill]] }
  0x28   : > { %s566_s27 = scalar_lea.vmem [#allocation6], %s2728_s23  ;;  %s2743_s28 = scalar_lea.sflag [#allocation7], %s562_s24 }
  0x29   : > { %s573_s17 = sshll.u32 %s566_s27, 4  ;;  %p2749_p2 = pneg %p2730_p13  ;;  %s574_s17 = int_to_ptr.vmem [resolvable:$true] %s573_s17 }
  0x2d   : > { %s3202_s19 = smov %s3201_s0  ;;  %s2739_s18 = scalar_lea.hbm %s3201_s0, %s2724_s29 }
  0x2e   : > { %s2402_s26 = scalar_lea.hbm %s2739_s18, 128  ;;  %s2407_s25 = scalar_lea.hbm %s3202_s19, 256 }
  0x2f   : > { %p2403_p1 = scmp.ne.s32.totalorder %s2739_s18, %s2402_s26  ;;  %p2408_p5 = scmp.lt.s32.totalorder %s2739_s18, %s3202_s19 }
  0x30   : > { %p2409_p7 = scmp.lt.s32.totalorder %s2407_s25, %s2402_s26 }
  0x31   : > { %p2405_p3 = pnand %p2749_p2, %p2403_p1 }
  0x32   : > { %p2410_p8 = por %p2409_p7, %p2408_p5 }
  0x33   : > { %p2406_p4 = pneg %p2405_p3 }
  0x35   : > { %p2411_p10 = pnand %p2410_p8, %p2406_p4 }
  0x37   : > { %2414 = shalt.err (!%p2411_p10)
}
  0x38   : > { %s2415_s24 = scalar_lea.vmem %s574_s17, 128  ;;  %s2556_s12 = smov [#allocation6]  }
  0x39   : > { %p2416_p9 = scmp.ne.s32.totalorder %s574_s17, %s2415_s24  ;;  %s2420_s11 = sshll.u32 %s2556_s12, 4  ;;  %s2421_s11 = int_to_ptr.vmem [resolvable:$false] %s2420_s11 }
  0x3a   : > { %s2422_s15 = scalar_lea.vmem %s2421_s11, 256  ;;  %p2423_p1 = scmp.lt.s32.totalorder %s574_s17, %s2421_s11 }
  0x3b   : > { %p2418_p0 = pnand %p2416_p9, %p2749_p2  ;;  %p2424_p3 = scmp.lt.s32.totalorder %s2422_s15, %s2415_s24 }
  0x3d   : > { %p2419_p12 = pneg %p2418_p0  ;;  %p2425_p11 = por %p2424_p3, %p2423_p1 }
  0x3f   : > { %p2426_p6 = pnand %p2425_p11, %p2419_p12 }
  0x41   : > { %2429 = shalt.err (!%p2426_p6)
}
  0x42   : > { %2332 = dma.hbm_to_vmem [thread:$0]  (!%p2730_p13), %s2739_s18, 128, %s574_s17, %s2743_s28  }
  0x43   : > { %p596_p9 = scmp.lt.s32.totalorder %s2554_s21, 3  ;;  %s3204_s26 = sld [smem:[#allocation20_spill]] }
  0x44   : > { %p3205_p0 = scmp.ge.s32.totalorder %s2554_s21, 1  ;;  %s548_s0 = scalar_lea.vmem [#allocation3], %s2728_s23 }
  0x45   : > { %s555_s2 = sshll.u32 %s548_s0, 4  ;;  %s3207_s25 = sand.u32 1, %s2550_s20   ;;  %s556_s2 = int_to_ptr.vmem [resolvable:$true] %s555_s2 }
  0x46   : > { %p2777_p6 = pnand %p3205_p0, %p596_p9  ;;  %s545_s27 = scalar_lea.sflag [#allocation4], %s3207_s25 }
  0x48   : > { %s3206_s15 = scalar_select %p2777_p6, 1, 0 }
  0x49   : > { %s2773_s11 = scalar_lea.hbm %s3204_s26, %s2724_s29  ;;  %s2435_s12 = scalar_lea.hbm %s3204_s26, 256 }
  0x4a   : > { %s2430_s17 = scalar_lea.hbm %s2773_s11, 128  ;;  %p2436_p5 = scmp.lt.s32.totalorder %s2773_s11, %s3204_s26 }
  0x4b   : > { %p2431_p11 = scmp.ne.s32.totalorder %s2773_s11, %s2430_s17  ;;  %p2437_p7 = scmp.lt.s32.totalorder %s2435_s12, %s2430_s17 }
  0x4d   : > { %p2433_p12 = pnand %p2431_p11, %p2749_p2  ;;  %p2438_p8 = por %p2437_p7, %p2436_p5 }
  0x4f   : > { %p2434_p4 = pneg %p2433_p12 }
  0x51   : > { %p2439_p10 = pnand %p2438_p8, %p2434_p4 }
  0x53   : > { %2442 = shalt.err (!%p2439_p10)
}
  0x54   : > { %s2443_s0 = scalar_lea.vmem %s556_s2, 128  ;;  %s2557_s25 = smov [#allocation3]  }
  0x55   : > { %p2444_p1 = scmp.ne.s32.totalorder %s556_s2, %s2443_s0  ;;  %s2448_s20 = sshll.u32 %s2557_s25, 4  ;;  %s2449_s20 = int_to_ptr.vmem [resolvable:$false] %s2448_s20 }
  0x56   : > { %s2450_s21 = scalar_lea.vmem %s2449_s20, 256  ;;  %p2451_p0 = scmp.lt.s32.totalorder %s556_s2, %s2449_s20 }
  0x57   : > { %p2446_p3 = pnand %p2444_p1, %p2749_p2  ;;  %p2452_p11 = scmp.lt.s32.totalorder %s2450_s21, %s2443_s0 }
  0x59   : > { %p2447_p9 = pneg %p2446_p3  ;;  %p2453_p12 = por %p2452_p11, %p2451_p0 }
  0x5b   : > { %p2454_p6 = pnand %p2453_p12, %p2447_p9 }
  0x5d   : > { %2457 = shalt.err (!%p2454_p6)
}
  0x5e   : > { %2329 = dma.hbm_to_vmem [thread:$0]  (!%p2730_p13), %s2773_s11, 128, %s556_s2, %s545_s27  }
  0x5f   : > { %s3208_s18 = sld [smem:[#allocation22_spill]]  ;;  %s584_s12 = scalar_lea.vmem [#allocation8], %s2728_s23 }
  0x60   : > { %s591_s14 = sshll.u32 %s584_s12, 4  ;;  %s592_s14 = int_to_ptr.vmem [resolvable:$true] %s591_s14 }
  0x65   : > { %s589_s24 = scalar_lea.hbm %s3208_s18, %s2724_s29  ;;  %s2463_s0 = scalar_lea.hbm %s3208_s18, 256 }
  0x66   : > { %s2458_s25 = scalar_lea.hbm %s589_s24, 128  ;;  %p2464_p6 = scmp.lt.s32.totalorder %s589_s24, %s3208_s18 }
  0x67   : > { %p2459_p4 = scmp.ne.s32.totalorder %s589_s24, %s2458_s25  ;;  %p2465_p8 = scmp.lt.s32.totalorder %s2463_s0, %s2458_s25 }
  0x69   : > { %p2461_p5 = pnand %p2459_p4, %p2749_p2  ;;  %p2466_p10 = por %p2465_p8, %p2464_p6 }
  0x6b   : > { %p2462_p7 = pneg %p2461_p5 }
  0x6d   : > { %p2467_p1 = pnand %p2466_p10, %p2462_p7 }
  0x6f   : > { %2470 = shalt.err (!%p2467_p1)
}
  0x70   : > { %s2471_s29 = scalar_lea.vmem %s592_s14, 128  ;;  %s2558_s23 = smov [#allocation8]  }
  0x71   : > { %p2472_p3 = scmp.ne.s32.totalorder %s592_s14, %s2471_s29  ;;  %s2476_s11 = sshll.u32 %s2558_s23, 4  ;;  %s2477_s11 = int_to_ptr.vmem [resolvable:$false] %s2476_s11 }
  0x72   : > { %s2478_s2 = scalar_lea.vmem %s2477_s11, 256  ;;  %p2479_p11 = scmp.lt.s32.totalorder %s592_s14, %s2477_s11 }
  0x73   : > { %p2474_p9 = pnand %p2472_p3, %p2749_p2  ;;  %p2480_p12 = scmp.lt.s32.totalorder %s2478_s2, %s2471_s29 }
  0x75   : > { %p2475_p0 = pneg %p2474_p9  ;;  %p2481_p4 = por %p2480_p12, %p2479_p11 }
  0x77   : > { %p2482_p5 = pnand %p2481_p4, %p2475_p0 }
  0x79   : > { %2485 = shalt.err (!%p2482_p5)
}
  0x7a   : > { %2335 = dma.hbm_to_vmem [thread:$0]  (!%p2730_p13), %s589_s24, 128, %s592_s14, %s2743_s28  }
  0x7b   : > { %p3209_p7 = scmp.ne.s32.totalorder %s3206_s15, 0 }
  0x7c   : > { %s2821_s13 = sand.u32 (!%p3209_p7), 1, %s2546_s30   ;;  %p3210_p2 = scmp.ne.s32.totalorder (!%p3209_p7), %s3195_s3, 0 }
  0x7d   : > { %600 = sbr.rel (%p3209_p7) target bundleno = 2526 (0x9de), region = 96  ;;  %s2824_s16 = sshll.u32 (!%p3209_p7), %s2821_s13, 3 }
  0x7e   : > { %s603_s26 = scalar_lea.sflag (!%p3209_p7), [#allocation4], %s2821_s13  ;;  %s606_s27 = scalar_lea.vmem (!%p3209_p7), [#allocation3], %s2824_s16 }
  0x82   : > { %2529 = dma.done.wait (%p3210_p2), %s603_s26, 128  }
  0x83   : > { %2531 = vsyncadd (%p3210_p2), %s603_s26, 4294967168  ;;  %s611_s28 = sand.u32 1, %s2689_s1   ;;  %s615_s15 = scalar_lea.vmem [#allocation6], %s2824_s16 }
  0x84   : > { %s612_s22 = scalar_lea.sflag [#allocation7], %s611_s28 }
  0x85   : > { %2533 = dma.done.wait (%p3210_p2), %s612_s22, 256  }
  0x86   : > { %2535 = vsyncadd (%p3210_p2), %s612_s22, 4294967040  ;;  %v2559_v0 = vmov 0.0   ;;  %vm2560_vm0 = vmmov 0   ;;  %s3211_s24 = sld [smem:[#allocation23_spill]]  ;;  %v2858_v5 = vld [vmem:[%s606_s27] sm:$0xff]  ;;  %vm703_vm1 = vcmask 261120  }
  0x87   : > { %2188 = vmatprep.subr.mxu1 %v2559_v0  ;;  %2196 = vmatprep.mubr.msk.f32.mxu1 %vm2560_vm0, %v2559_v0  ;;  %v780_v6 = vld [vmem:[%s3142_s5 + $0x18] sm:$0xff]  ;;  %v779_v7 = vld [vmem:[%s3142_s5 + $0x10] sm:$0xff]  ;;  %v778_v8 = vld [vmem:[%s3142_s5 + $0x8] sm:$0xff]  ;;  %s624_s20 = scalar_lea.vmem [#allocation8], %s2824_s16  ;;  %vm945_vm2 = vcmask 64512   ;;  %s2561_s11 = smov 112  }
  0x88   : > { %2231 = vmatprep.subr.mxu0 %v2559_v0  ;;  %2233 = vmatprep.mubr.msk.f32.mxu0 %vm2560_vm0, %v2559_v0  ;;  %v777_v9 = vld [vmem:[%s3142_s5] sm:$0xff]  ;;  %v864_v11 = vld [vmem:[%s3144_s7 + $0x18] sm:$0xff]  ;;  %v863_v12 = vld [vmem:[%s3144_s7 + $0x10] sm:$0xff]  ;;  %s2562_s2 = smov 120   ;;  %s2563_s26 = smov 104   ;;  %vm1283_vm3 = vcmask 130112  }
  0x89   : > { %v690_v10 = vld [vmem:[%s615_s15] sm:$0xff]  ;;  %v862_v13 = vld [vmem:[%s3144_s7 + $0x8] sm:$0xff]  ;;  %s2565_s21 = smov 16   ;;  %s2566_s0 = smov 24   ;;  %vm1457_vm4 = vcmask 195712   ;;  %vm1631_vm5 = vcmask 261312  }
  0x8a   : > { %v861_v14 = vld [vmem:[%s3144_s7] sm:$0xff]  ;;  %v691_v15 = vld [vmem:[%s624_s20] sm:$0xff]  ;;  %s2564_s20 = smov 8   ;;  %s3213_s3 = sld [smem:[#allocation28_spill]] }
  0x8b   : > { %v2101_v18 = vld [vmem:[%s3143_s6] ss:$0 sm:$0xff]  ;;  %s3214_s22 = sld [smem:[#allocation24_spill]]  ;;  %s1959_s27 = scalar_lea.sflag [#allocation5], %s2821_s13 }
  0x8c   : > { %v695_v1 = vld [vmem:[%s3211_s24 + $0x18] sm:$0xff]  ;;  %v694_v2 = vld [vmem:[%s3211_s24 + $0x10] sm:$0xff]  ;;  %v693_v3 = vld [vmem:[%s3211_s24 + $0x8] sm:$0xff]  ;;  %s3215_s12 = sld [smem:[#allocation25_spill]]  ;;  %s2567_s19 = smov [#allocation9]  }
  0x8d   : > { %2189 = vmatpush3.msra.mxu1 %v695_v1  ;;  %v692_v4 = vld [vmem:[%s3211_s24] sm:$0xff]  ;;  %s3217_s28 = sld [smem:[#allocation29_spill]]  ;;  %s2490_s17 = sshll.u32 %s2567_s19, 4  ;;  %s2491_s17 = int_to_ptr.vmem [resolvable:$false] %s2490_s17 }
  0x8e   : > { %2190 = vmatprep.subr.mxu1 %v2559_v0  ;;  %v2099_v21 = vld [vmem:[%s3141_s4] ss:$0 sm:$0xff]  ;;  %s3220_s25 = sld [smem:[#allocation31_spill]] }
  0x8f   : > { %2191 = vmatpush3.msra.mxu1 %v694_v2  ;;  %v2103_v24 = vld [vmem:[%s3145_s8] ss:$0 sm:$0xff] }
  0x90   : > { %2192 = vmatprep.subr.mxu1 %v2559_v0 }
  0x91   : > { %2193 = vmatpush3.msra.mxu1 %v693_v3 }
  0x92   : > { %2194 = vmatprep.subr.mxu1 %v2559_v0 }
  0x93   : > { %2195 = vmatpush3.msra.mxu1 %v692_v4 }
  0x94   : > { %2197 = vmatmul.mubr.msk.f32.vlgmr.msra.gmra.mxu1 %vm703_vm1, %v2858_v5  ;;  %2199 = vmatprep.subr.mxu1 %v2559_v0 }
  0x95   : > { %2200 = vmatpush3.msra.mxu1 %v780_v6  ;;  %2207 = vmatprep.mubr.msk.f32.mxu1 %vm2560_vm0, %v2559_v0 }
  0x96   : > { %2201 = vmatprep.subr.mxu1 %v2559_v0 }
  0x97   : > { %2202 = vmatpush3.msra.mxu1 %v779_v7 }
  0x98   : > { %2203 = vmatprep.subr.mxu1 %v2559_v0 }
  0x99   : > { %2204 = vmatpush3.msra.mxu1 %v778_v8 }
  0x9a   : > { %2205 = vmatprep.subr.mxu1 %v2559_v0 }
  0x9b   : > { %2206 = vmatpush3.msra.mxu1 %v777_v9 }
  0x9c   : > { %2208 = vmatmul.mubr.msk.f32.vlgmr.msra.gmra.mxu1 %vm703_vm1, %v690_v10  ;;  %2210 = vmatprep.subr.mxu1 %v2559_v0 }
  0x9d   : > { %2218 = vmatprep.mubr.msk.f32.mxu1 %vm2560_vm0, %v2559_v0  ;;  %2211 = vmatpush3.msra.mxu1 %v864_v11 }
  0x9e   : > { %2212 = vmatprep.subr.mxu1 %v2559_v0 }
  0x9f   : > { %2213 = vmatpush3.msra.mxu1 %v863_v12 }
  0xa0   : > { %2214 = vmatprep.subr.mxu1 %v2559_v0 }
  0xa1   : > { %2215 = vmatpush3.msra.mxu1 %v862_v13 }
  0xa2   : > { %2216 = vmatprep.subr.mxu1 %v2559_v0 }
  0xa3   : > { %2217 = vmatpush3.msra.mxu1 %v861_v14 }
  0xa4   : > { %2219 = vmatmul.mubr.msk.f32.vlgmr.msra.gmra.mxu1 %vm703_vm1, %v691_v15  ;;  %2221 = vmatprep.subr.mxu1 %v2559_v0 }
  0xa5   : > { %2223 = vmatprep.mubr.msk.f32.mxu1 %vm2560_vm0, %v2559_v0 }
 0x154   : > { %v773_v16 = vpop.f32.mrf.mxu1 }
 0x155   : > { %v774_v23 = vadd.f32 %v2099_v21, %v773_v16 }
 0x156   : > { %v2198_v17 = vpop.f32.mrf.mxu1 }
 0x15c   : > { %v857_v19 = vpop.f32.mrf.mxu1 }
 0x15d   : > { %v858_v20 = vadd.f32 %v2101_v18, %v857_v19 }
 0x15e   : > { %v2209_v22 = vpop.f32.mrf.mxu1 }
 0x15f   : > { %1287 = vrot.lane.b32.xlu1 %v858_v20, %s2561_s11  ;;  %1112 = vrot.lane.b32.xlu0 %v858_v20, %s2562_s2 }
 0x160   : > { %2222 = vmatpush3.xpose.msk.msra.mxu1 %vm945_vm2, %v858_v20 }
 0x161   : > { %2226 = vmatprep.subr.mxu1 %v2559_v0 }
 0x163   : > { %2224 = vmatmul.mubr.msk.f32.vlgmr.msra.gmra.mxu1 %vm945_vm2, %v774_v23  ;;  %1285 = vrot.lane.b32.xlu1 %v774_v23, %s2561_s11 }
 0x164   : > { %1110 = vrot.lane.b32.xlu0 %v774_v23, %s2562_s2  ;;  %2228 = vmatprep.mubr.msk.f32.mxu1 %vm2560_vm0, %v2559_v0  ;;  %v941_v25 = vpop.f32.mrf.mxu1 }
 0x165   : > { %v2927_v26 = vadd.f32 %v2103_v24, %v941_v25 }
 0x166   : > { %v2220_v27 = vpop.f32.mrf.mxu1 }
 0x167   : > { %1459 = vrot.lane.b32.xlu1 %v774_v23, %s2563_s26  ;;  %2227 = vmatpush3.msra.mxu1 %v2927_v26 }
 0x168   : > { %1461 = vrot.lane.b32.xlu0 %v858_v20, %s2563_s26  ;;  %2236 = vmatprep.subr.mxu1 %v2559_v0 }
 0x1d1   : > { %v1113_v28 = vpop.permute.xlu0 %1112  ;;  %v1288_v29 = vpop.permute.xlu1 %1287 }
 0x1d2   : > { %2232 = vmatpush3.xpose.msk.msra.mxu0 %vm945_vm2, %v1113_v28 }
 0x1d3   : > { %2241 = vmatprep.subr.mxu0 %v2559_v0 }
 0x1d5   : > { %v1286_v31 = vpop.permute.xlu1 %1285 }
 0x1d6   : > { %v1111_v30 = vpop.permute.xlu0 %1110 }
 0x1d7   : > { %2234 = vmatmul.mubr.msk.f32.vlgmr.msra.gmra.mxu0 %vm945_vm2, %v1111_v30 }
 0x1d8   : > { %2242 = vmatpush3.xpose.msk.msra.mxu0 %vm945_vm2, %v1288_v29  ;;  %2243 = vmatprep.mubr.msk.f32.mxu0 %vm2560_vm0, %v2559_v0 }
 0x1d9   : > { %2251 = vmatprep.subr.mxu0 %v2559_v0  ;;  %v1460_v33 = vpop.permute.xlu1 %1459 }
 0x1da   : > { %v1462_v32 = vpop.permute.xlu0 %1461 }
 0x1db   : > { %2244 = vmatmul.mubr.msk.f32.vlgmr.msra.gmra.mxu0 %vm945_vm2, %v1286_v31 }
 0x1dc   : > { %2252 = vmatpush3.xpose.msk.msra.mxu0 %vm945_vm2, %v1462_v32  ;;  %2253 = vmatprep.mubr.msk.f32.mxu0 %vm2560_vm0, %v2559_v0 }
 0x1dd   : > { %2261 = vmatprep.subr.mxu0 %v2559_v0 }
 0x1df   : > { %2254 = vmatmul.mubr.msk.f32.vlgmr.msra.gmra.mxu0 %vm945_vm2, %v1460_v33  ;;  %v1637_v33 = vld [vmem:[%s3146_s9 + $0x18] sm:$0xff] }
 0x1e0   : > { %2269 = vmatprep.mubr.msk.f32.mxu0 %vm2560_vm0, %v2559_v0  ;;  %2262 = vmatpush3.msra.mxu0 %v1637_v33 }
 0x1e1   : > { %2263 = vmatprep.subr.mxu0 %v2559_v0 }
 0x223   : > { %v1018_v34 = vpop.f32.mrf.mxu1 }
 0x224   : > { %v1022_v35 = vsel %vm945_vm2, %v1018_v34, -inf }
 0x225   : > { %1023 = vmax.xlane.f32.xlu0 %v1022_v35  ;;  %v2225_v36 = vpop.f32.mrf.mxu1  ;;  %v1635_v35 = vld [vmem:[%s3146_s9 + $0x8] sm:$0xff] }
 0x297   : > { %v1184_v37 = vpop.f32.mrf.mxu0 }
 0x298   : > { %v1188_v38 = vsel %vm945_vm2, %v1184_v37, -inf }
 0x299   : > { %1189 = vmax.xlane.f32.xlu1 %v1188_v38  ;;  %v2235_v39 = vpop.f32.mrf.mxu0 }
 0x29b   : > { %v1359_v40 = vpop.f32.mrf.mxu0 }
 0x29c   : > { %v1363_v41 = vsel %vm945_vm2, %v1359_v40, -inf }
 0x29d   : > { %v2245_v42 = vpop.f32.mrf.mxu0  ;;  %1364 = vmax.xlane.f32.xlu0 %v1363_v41 }
 0x29f   : > { %v1533_v43 = vpop.f32.mrf.mxu0 }
 0x2a0   : > { %v1537_v44 = vsel %vm945_vm2, %v1533_v43, -inf }
 0x2a1   : > { %v2255_v45 = vpop.f32.mrf.mxu0  ;;  %1538 = vmax.xlane.f32.xlu0 %v1537_v44 }
 0x2ae   : > { %v1024_v46 = vpop.xlane.xlu0 %1023 }
 0x2af   : > { %v1025_v47 = vsub.f32 %v1018_v34, %v1024_v46  ;;  %v1636_v34 = vld [vmem:[%s3146_s9 + $0x10] sm:$0xff] }
 0x2b0   : > { %2264 = vmatpush3.msra.mxu0 %v1636_v34 }
 0x2b1   : > { %v1026_v48 = vmul.f32 1.442695, %v1025_v47  ;;  %2265 = vmatprep.subr.mxu0 %v2559_v0  ;;  %v2117_v47 = vld [vmem:[%s3147_s10] ss:$0 sm:$0xff] }
 0x2b2   : > { %2266 = vmatpush3.msra.mxu0 %v1635_v35 }
 0x2b3   : > { %2382 = vpow2.f32 %v1026_v48  ;;  %2267 = vmatprep.subr.mxu0 %v2559_v0 }
 0x2c0   : > { %v2383_v49 = vpop.eup %2382 }
 0x2c1   : > { %v1028_v50 = vsel %vm945_vm2, %v2383_v49, 0.0 }
 0x2c2   : > { %1029 = vadd.xlane.f32.xlu1 %v1028_v50 }
 0x322   : > { %v1190_v51 = vpop.xlane.xlu1 %1189 }
 0x323   : > { %v1191_v52 = vsub.f32 %v1184_v37, %v1190_v51  ;;  %v1634_v37 = vld [vmem:[%s3146_s9] sm:$0xff] }
 0x324   : > { %2268 = vmatpush3.msra.mxu0 %v1634_v37 }
 0x325   : > { %v1192_v53 = vmul.f32 1.442695, %v1191_v52  ;;  %2283 = vmatprep.subr.mxu0 %v2559_v0 }
 0x326   : > { %v1365_v54 = vpop.xlane.xlu0 %1364 }
 0x327   : > { %2384 = vpow2.f32 %v1192_v53  ;;  %v1366_v55 = vsub.f32 %v1359_v40, %v1365_v54 }
 0x329   : > { %v1367_v56 = vmul.f32 1.442695, %v1366_v55 }
 0x32a   : > { %v1539_v57 = vpop.xlane.xlu0 %1538 }
 0x32b   : > { %2386 = vpow2.f32 %v1367_v56  ;;  %v1540_v58 = vsub.f32 %v1533_v43, %v1539_v57 }
 0x32d   : > { %v1541_v59 = vmul.f32 1.442695, %v1540_v58 }
 0x32f   : > { %2388 = vpow2.f32 %v1541_v59 }
 0x334   : > { %v2385_v60 = vpop.eup %2384 }
 0x335   : > { %v1194_v61 = vsel %vm945_vm2, %v2385_v60, 0.0 }
 0x336   : > { %1195 = vadd.xlane.f32.xlu0 %v1194_v61  ;;  %v1849_v61 = vld [vmem:[%s3213_s3 + $0x78] sm:$0xff] }
 0x338   : > { %v2387_v62 = vpop.eup %2386 }
 0x339   : > { %v1369_v63 = vsel %vm945_vm2, %v2387_v62, 0.0 }
 0x33a   : > { %1370 = vadd.xlane.f32.xlu1 %v1369_v63  ;;  %v1847_v63 = vld [vmem:[%s3213_s3 + $0x68] sm:$0xff] }
 0x33c   : > { %v2389_v1 = vpop.eup %2388 }
 0x33d   : > { %v1543_v2 = vsel %vm945_vm2, %v2389_v1, 0.0 }
 0x33e   : > { %1544 = vadd.xlane.f32.xlu0 %v1543_v2  ;;  %v1845_v2 = vld [vmem:[%s3213_s3 + $0x58] sm:$0xff] }
 0x34b   : > { %v1030_v3 = vpop.xlane.xlu1 %1029  ;;  %1203 = vrot.lane.b32.xlu1 %v2927_v26, %s2562_s2 }
 0x34c   : > { %2390 = vrcp.f32 %v1030_v3 }
 0x34f   : > { %1551 = vrot.lane.b32.xlu1 %v2927_v26, %s2563_s26  ;;  %s3212_s26 = sld [smem:[#allocation26_spill]] }
 0x354   : > { %1377 = vrot.lane.b32.xlu0 %v2927_v26, %s2561_s11  ;;  %s3216_s11 = sld [smem:[#allocation27_spill]] }
 0x355   : > { %v1752_v58 = vld [vmem:[%s3212_s26 + $0x18] sm:$0xff]  ;;  %v1751_v59 = vld [vmem:[%s3212_s26 + $0x10] sm:$0xff] }
 0x359   : > { %v2391_v4 = vpop.eup %2390 }
 0x35a   : > { %v1032_v6 = vmul.f32 %v2391_v4, %v1030_v3  ;;  %v1844_v3 = vld [vmem:[%s3213_s3 + $0x50] sm:$0xff] }
 0x35c   : > { %v1033_v7 = vsub.f32 2.0, %v1032_v6  ;;  %v1842_v6 = vld [vmem:[%s3213_s3 + $0x40] sm:$0xff] }
 0x35e   : > { %v1034_v8 = vmul.f32 %v2391_v4, %v1033_v7  ;;  %v1843_v4 = vld [vmem:[%s3213_s3 + $0x48] sm:$0xff]  ;;  %v1841_v7 = vld [vmem:[%s3213_s3 + $0x38] sm:$0xff] }
 0x360   : > { %v1035_v9 = vmul.f32 %v2383_v49, %v1034_v8  ;;  %v1840_v8 = vld [vmem:[%s3213_s3 + $0x30] sm:$0xff] }
 0x362   : > { %2229 = vmatmul.mubr.msk.f32.vlgmr.msra.gmra.mxu1 %vm945_vm2, %v1035_v9  ;;  %v1839_v9 = vld [vmem:[%s3213_s3 + $0x28] sm:$0xff] }
 0x363   : > { %2238 = vmatprep.mubr.msk.f32.mxu1 %vm2560_vm0, %v2559_v0 }
 0x3bf   : > { %v1196_v10 = vpop.xlane.xlu0 %1195 }
 0x3c0   : > { %2392 = vrcp.f32 %v1196_v10 }
 0x3c3   : > { %v1371_v11 = vpop.xlane.xlu1 %1370 }
 0x3c4   : > { %2394 = vrcp.f32 %v1371_v11 }
 0x3c7   : > { %v1204_v12 = vpop.permute.xlu1 %1203  ;;  %v1545_v13 = vpop.xlane.xlu0 %1544 }
 0x3c8   : > { %2396 = vrcp.f32 %v1545_v13  ;;  %2237 = vmatpush3.msra.mxu1 %v1204_v12 }
 0x3c9   : > { %2246 = vmatprep.subr.mxu1 %v2559_v0 }
 0x3cb   : > { %v1378_v25 = vpop.permute.xlu0 %1377  ;;  %v1552_v29 = vpop.permute.xlu1 %1551 }
 0x3cd   : > { %v2393_v14 = vpop.eup %2392 }
 0x3ce   : > { %v1198_v15 = vmul.f32 %v2393_v14, %v1196_v10  ;;  %v1838_v10 = vld [vmem:[%s3213_s3 + $0x20] sm:$0xff] }
 0x3d0   : > { %v1199_v16 = vsub.f32 2.0, %v1198_v15 }
 0x3d1   : > { %v2395_v17 = vpop.eup %2394 }
 0x3d2   : > { %v1200_v18 = vmul.f32 %v2393_v14, %v1199_v16  ;;  %v1373_v19 = vmul.f32 %v2395_v17, %v1371_v11  ;;  %v1837_v11 = vld [vmem:[%s3213_s3 + $0x18] sm:$0xff]  ;;  %v2119_v16 = vld [vmem:[%s3214_s22] ss:$0 sm:$0xff]  ;;  %s3218_s22 = sld [smem:[#allocation18_spill]] }
 0x3d4   : > { %v1201_v20 = vmul.f32 %v2385_v60, %v1200_v18  ;;  %v1374_v21 = vsub.f32 2.0, %v1373_v19  ;;  %v1749_v60 = vld [vmem:[%s3212_s26] sm:$0xff] }
 0x3d5   : > { %v2397_v22 = vpop.eup %2396  ;;  %v2120_v18 = vld [vmem:[%s3215_s12] ss:$0 sm:$0xff]  ;;  %s3219_s12 = sld [smem:[#allocation30_spill]] }
 0x3d6   : > { %v1375_v23 = vmul.f32 %v2395_v17, %v1374_v21  ;;  %v1547_v24 = vmul.f32 %v2397_v22, %v1545_v13  ;;  %2239 = vmatmul.mubr.msk.f32.vlgmr.msra.gmra.mxu1 %vm945_vm2, %v1201_v20  ;;  %v1836_v21 = vld [vmem:[%s3213_s3 + $0x10] sm:$0xff] }
 0x3d7   : > { %2247 = vmatpush3.msra.mxu1 %v1378_v25  ;;  %2248 = vmatprep.mubr.msk.f32.mxu1 %vm2560_vm0, %v2559_v0 }
 0x3d8   : > { %v1376_v26 = vmul.f32 %v2387_v62, %v1375_v23  ;;  %v1548_v27 = vsub.f32 2.0, %v1547_v24  ;;  %2256 = vmatprep.subr.mxu1 %v2559_v0  ;;  %v1848_v62 = vld [vmem:[%s3213_s3 + $0x70] sm:$0xff]  ;;  %v1834_v23 = vld [vmem:[%s3213_s3] sm:$0xff]  ;;  %p3222_p6 = scmp.ne.s32.totalorder %s3218_s22, 0 }
 0x3d9   : > { %v2121_v24 = vld [vmem:[%s3216_s11] ss:$0 sm:$0xff]  ;;  %s3221_s11 = sld [smem:[#allocation32_spill]] }
 0x3da   : > { %v1549_v28 = vmul.f32 %v2397_v22, %v1548_v27  ;;  %2249 = vmatmul.mubr.msk.f32.vlgmr.msra.gmra.mxu1 %vm945_vm2, %v1376_v26  ;;  %v1835_v22 = vld [vmem:[%s3213_s3 + $0x8] sm:$0xff] }
 0x3db   : > { %2257 = vmatpush3.msra.mxu1 %v1552_v29  ;;  %2258 = vmatprep.mubr.msk.f32.mxu1 %vm2560_vm0, %v2559_v0  ;;  %v2123_v29 = vld [vmem:[%s3217_s28] ss:$0 sm:$0xff] }
 0x3dc   : > { %v1550_v30 = vmul.f32 %v2389_v1, %v1549_v28  ;;  %2272 = vmatprep.subr.mxu1 %v2559_v0  ;;  %v1846_v1 = vld [vmem:[%s3213_s3 + $0x60] sm:$0xff] }
 0x3de   : > { %2259 = vmatmul.mubr.msk.f32.vlgmr.msra.gmra.mxu1 %vm945_vm2, %v1550_v30 }
 0x3df   : > { %2280 = vmatprep.mubr.msk.f32.mxu1 %vm2560_vm0, %v2559_v0  ;;  %2273 = vmatpush3.msra.mxu1 %v1752_v58 }
 0x3e0   : > { %2274 = vmatprep.subr.mxu1 %v2559_v0 }
 0x3e1   : > { %2275 = vmatpush3.msra.mxu1 %v1751_v59 }
 0x3e2   : > { %2276 = vmatprep.subr.mxu1 %v2559_v0 }
 0x422   : > { %v1105_v31 = vpop.f32.mrf.mxu1 }
 0x423   : > { %1109 = vst.msk [vmem:[#allocation2] sm:$0xff] %vm945_vm2, %v1105_v31 }
 0x424   : > { %v2230_v32 = vpop.f32.mrf.mxu1 }
 0x496   : > { %v1275_v36 = vpop.f32.mrf.mxu1 }
 0x497   : > { %1280 = vrot.lane.b32.xlu1 %v1275_v36, %s2564_s20  ;;  %s2127_s20 = sshll.u32 %s2689_s1, 7  ;;  %s2492_s1 = scalar_lea.vmem %s2491_s17, 256 }
 0x498   : > { %v2240_v38 = vpop.f32.mrf.mxu1  ;;  %s1970_s2 = scalar_lea.hbm %s3221_s11, %s2127_s20 }
 0x49a   : > { %v1449_v39 = vpop.f32.mrf.mxu1 }
 0x49b   : > { %1454 = vrot.lane.b32.xlu0 %v1449_v39, %s2565_s21  ;;  %s688_s21 = scalar_lea.vmem [#allocation9], %s2824_s16 }
 0x49c   : > { %v2250_v40 = vpop.f32.mrf.mxu1 }
 0x49e   : > { %v1623_v41 = vpop.f32.mrf.mxu1 }
 0x49f   : > { %1628 = vrot.lane.b32.xlu1 %v1623_v41, %s2566_s0  ;;  %s1972_s0 = sshll.u32 %s688_s21, 4  ;;  %s1973_s0 = int_to_ptr.vmem [resolvable:$true] %s1972_s0 }
 0x4a0   : > { %v2260_v42 = vpop.f32.mrf.mxu1  ;;  %s2486_s28 = scalar_lea.vmem %s1973_s0, 128  ;;  %p2493_p1 = scmp.lt.s32.totalorder %s1973_s0, %s2491_s17 }
 0x4a1   : > { %p2487_p13 = scmp.ne.s32.totalorder %s1973_s0, %s2486_s28  ;;  %p2494_p3 = scmp.lt.s32.totalorder %s2492_s1, %s2486_s28 }
 0x4a3   : > { %p2488_p8 = pnand %p2487_p13, %p3222_p6  ;;  %p2495_p9 = por %p2494_p3, %p2493_p1 }
 0x4a5   : > { %p2489_p10 = pneg %p2488_p8 }
 0x4a7   : > { %p2496_p0 = pnand %p2495_p9, %p2489_p10 }
 0x509   : > { %v1281_v43 = vpop.permute.xlu1 %1280 }
 0x50a   : > { %1284 = vst.msk [vmem:[#allocation2] sm:$0xff] %vm1283_vm3, %v1281_v43  ;;  %v2124_v43 = vld [vmem:[%s3219_s12] ss:$0 sm:$0xff] }
 0x50d   : > { %v1455_v44 = vpop.permute.xlu0 %1454 }
 0x50e   : > { %1458 = vst.msk [vmem:[#allocation2] sm:$0xff] %vm1457_vm4, %v1455_v44 }
 0x511   : > { %v1629_v45 = vpop.permute.xlu1 %1628 }
 0x512   : > { %1632 = vst.msk [vmem:[#allocation2] sm:$0xff] %vm1631_vm5, %v1629_v45  ;;  %v2125_v45 = vld [vmem:[%s3220_s25] ss:$0 sm:$0xff] }
 0x519   : > { %v1633_v46 = vld [vmem:[#allocation2] sm:$0xff] }
 0x51a   : > { %2270 = vmatmul.mubr.msk.f32.vlgmr.msra.gmra.mxu0 %vm703_vm1, %v1633_v46 }
 0x51b   : > { %2315 = vmatprep.mubr.msk.f32.mxu0 %vm2560_vm0, %v2559_v0  ;;  %2284 = vmatpush3.msra.mxu0 %v1849_v61 }
 0x51c   : > { %2285 = vmatprep.subr.mxu0 %v2559_v0 }
 0x51d   : > { %2286 = vmatpush3.msra.mxu0 %v1848_v62 }
 0x51e   : > { %2287 = vmatprep.subr.mxu0 %v2559_v0 }
 0x51f   : > { %2288 = vmatpush3.msra.mxu0 %v1847_v63 }
 0x520   : > { %2289 = vmatprep.subr.mxu0 %v2559_v0 }
 0x521   : > { %2290 = vmatpush3.msra.mxu0 %v1846_v1 }
 0x522   : > { %2291 = vmatprep.subr.mxu0 %v2559_v0 }
 0x523   : > { %2292 = vmatpush3.msra.mxu0 %v1845_v2 }
 0x524   : > { %2293 = vmatprep.subr.mxu0 %v2559_v0 }
 0x525   : > { %2294 = vmatpush3.msra.mxu0 %v1844_v3 }
 0x526   : > { %2295 = vmatprep.subr.mxu0 %v2559_v0 }
 0x527   : > { %2296 = vmatpush3.msra.mxu0 %v1843_v4 }
 0x528   : > { %2297 = vmatprep.subr.mxu0 %v2559_v0 }
 0x529   : > { %2298 = vmatpush3.msra.mxu0 %v1842_v6 }
 0x52a   : > { %2299 = vmatprep.subr.mxu0 %v2559_v0 }
 0x52b   : > { %2300 = vmatpush3.msra.mxu0 %v1841_v7 }
 0x52c   : > { %2301 = vmatprep.subr.mxu0 %v2559_v0 }
 0x52d   : > { %2302 = vmatpush3.msra.mxu0 %v1840_v8 }
 0x52e   : > { %2303 = vmatprep.subr.mxu0 %v2559_v0 }
 0x52f   : > { %2304 = vmatpush3.msra.mxu0 %v1839_v9 }
 0x530   : > { %2305 = vmatprep.subr.mxu0 %v2559_v0 }
 0x531   : > { %2306 = vmatpush3.msra.mxu0 %v1838_v10 }
 0x532   : > { %2307 = vmatprep.subr.mxu0 %v2559_v0 }
 0x533   : > { %2308 = vmatpush3.msra.mxu0 %v1837_v11 }
 0x534   : > { %2309 = vmatprep.subr.mxu0 %v2559_v0 }
 0x535   : > { %2310 = vmatpush3.msra.mxu0 %v1836_v21 }
 0x536   : > { %2311 = vmatprep.subr.mxu0 %v2559_v0 }
 0x537   : > { %2312 = vmatpush3.msra.mxu0 %v1835_v22 }
 0x538   : > { %2313 = vmatprep.subr.mxu0 %v2559_v0 }
 0x539   : > { %2314 = vmatpush3.msra.mxu0 %v1834_v23 }
 0x5da   : > { %v1714_v48 = vpop.f32.mrf.mxu0 }
 0x5db   : > { %v1715_v49 = vadd.f32 %v2117_v47, %v1714_v48 }
 0x5dc   : > { %v2271_v50 = vpop.f32.mrf.mxu0 }
 0x5dd   : > { %v1718_v51 = vadd.f32 %v1715_v49, %v2858_v5  ;;  %v1750_v5 = vld [vmem:[%s3212_s26 + $0x8] sm:$0xff] }
 0x5de   : > { %2277 = vmatpush3.msra.mxu1 %v1750_v5 }
 0x5df   : > { %v1721_v52 = vsel %vm703_vm1, %v1718_v51, 0.0  ;;  %2278 = vmatprep.subr.mxu1 %v2559_v0 }
 0x5e0   : > { %1722 = vadd.xlane.f32.xlu0 %v1721_v52  ;;  %2279 = vmatpush3.msra.mxu1 %v1749_v60 }
 0x669   : > { %v1723_v53 = vpop.xlane.xlu0 %1722 }
 0x66a   : > { %v1725_v54 = vmul.f32 0.03125, %v1723_v53 }
 0x66c   : > { %v1726_v55 = vsub.f32 %v1718_v51, %v1725_v54 }
 0x66e   : > { %v1727_v56 = vmul.f32 %v1726_v55, %v1726_v55 }
 0x670   : > { %v1728_v57 = vsel %vm703_vm1, %v1727_v56, 0.0 }
 0x671   : > { %1729 = vadd.xlane.f32.xlu1 %v1728_v57 }
 0x6fa   : > { %v1730_v12 = vpop.xlane.xlu1 %1729 }
 0x6fb   : > { %v1731_v13 = vmul.f32 0.03125, %v1730_v12 }
 0x6fd   : > { %v1732_v14 = vadd.f32 1e-05, %v1731_v13 }
 0x6ff   : > { %2398 = vrsqrt.f32 %v1732_v14 }
 0x70c   : > { %v2399_v15 = vpop.eup %2398 }
 0x70d   : > { %v1734_v17 = vmul.f32 %v2399_v15, %v1726_v55 }
 0x70f   : > { %v1741_v19 = vmul.f32 %v2119_v16, %v1734_v17 }
 0x711   : > { %v1748_v20 = vadd.f32 %v2120_v18, %v1741_v19 }
 0x713   : > { %2281 = vmatmul.mubr.msk.f32.vlgmr.msra.gmra.mxu1 %vm703_vm1, %v1748_v20 }
 0x7d3   : > { %v1829_v25 = vpop.f32.mrf.mxu1 }
 0x7d4   : > { %v1830_v26 = vadd.f32 %v2121_v24, %v1829_v25 }
 0x7d5   : > { %v2282_v27 = vpop.f32.mrf.mxu1 }
 0x7d6   : > { %v1833_v28 = vmax.f32 %v1830_v26, 0.0 }
 0x7d8   : > { %2316 = vmatmul.mubr.f32.vlgmr.msra.gmra.mxu0 %v1833_v28 }
 0x898   : > { %v1923_v30 = vpop.f32.mrf.mxu0 }
 0x899   : > { %v1924_v31 = vadd.f32 %v2123_v29, %v1923_v30 }
 0x89a   : > { %v2317_v32 = vpop.f32.mrf.mxu0 }
 0x89b   : > { %v1927_v33 = vadd.f32 %v1924_v31, %v1748_v20 }
 0x89d   : > { %v1930_v0 = vsel %vm703_vm1, %v1927_v33, 0.0 }
 0x89e   : > { %1931 = vadd.xlane.f32.xlu0 %v1930_v0 }
 0x927   : > { %v1932_v34 = vpop.xlane.xlu0 %1931 }
 0x928   : > { %v1933_v35 = vmul.f32 0.03125, %v1932_v34 }
 0x92a   : > { %v1934_v36 = vsub.f32 %v1927_v33, %v1933_v35 }
 0x92c   : > { %v1935_v37 = vmul.f32 %v1934_v36, %v1934_v36 }
 0x92e   : > { %v1936_v38 = vsel %vm703_vm1, %v1935_v37, 0.0 }
 0x92f   : > { %1937 = vadd.xlane.f32.xlu0 %v1936_v38 }
 0x9b8   : > { %v1938_v39 = vpop.xlane.xlu0 %1937 }
 0x9b9   : > { %v1939_v40 = vmul.f32 0.03125, %v1938_v39 }
 0x9bb   : > { %v1940_v41 = vadd.f32 1e-05, %v1939_v40 }
 0x9bd   : > { %2400 = vrsqrt.f32 %v1940_v41 }
 0x9ca   : > { %v2401_v42 = vpop.eup %2400 }
 0x9cb   : > { %v1942_v44 = vmul.f32 %v2401_v42, %v1934_v36 }
 0x9cd   : > { %v1949_v46 = vmul.f32 %v2124_v43, %v1942_v44 }
 0x9cf   : > { %v1956_v47 = vadd.f32 %v2125_v45, %v1949_v46 }
 0x9d1   : > { %1957 = vst.msk [vmem:[%s688_s21] sm:$0xff] %vm703_vm1, %v1956_v47 }
 0x9d2   : > { %2499 = shalt.err (!%p2496_p0)
}
 0x9d3   : > { %s2500_s16 = scalar_lea.hbm %s1970_s2, 128  ;;  %s2504_s15 = scalar_lea.hbm %s3221_s11, 256 }
 0x9d4   : > { %p2501_p11 = scmp.ne.s32.totalorder %s1970_s2, %s2500_s16  ;;  %p2505_p5 = scmp.lt.s32.totalorder %s1970_s2, %s3221_s11 }
 0x9d5   : > { %p2506_p7 = scmp.lt.s32.totalorder %s2504_s15, %s2500_s16 }
 0x9d6   : > { %p2502_p12 = pnand %p2501_p11, %p3222_p6 }
 0x9d7   : > { %p2507_p2 = por %p2506_p7, %p2505_p5 }
 0x9d8   : > { %p2503_p4 = pneg %p2502_p12 }
 0x9da   : > { %p2508_p13 = pnand %p2507_p2, %p2503_p4 }
 0x9dc   : > { %2511 = shalt.err (!%p2508_p13)
}
 0x9dd   : > { %2324 = dma.vmem_to_hbm [thread:$0]  (%p3222_p6), %s1973_s0, 128, %s1970_s2, %s1959_s27  }
 0x9de PF: > { %s3223_s20 = sld [smem:[#allocation13_spill]] }
 0x9df   : > { %s3224_s21 = sld [smem:[#allocation19_spill]] }
 0x9e0   : > { %s3225_s29 = sld [smem:[#allocation15_spill]] }
 0x9e4   : > { %s1984_s23 = sand.u32 1, %s3223_s20  }
 0x9e5   : > { %p3226_p8 = scmp.ne.s32.totalorder %s3224_s21, 0  ;;  %s1985_s28 = scalar_lea.sflag [#allocation5], %s1984_s23 }
 0x9e6   : > { %p3227_p10 = scmp.ge.s32.totalorder %s3225_s29, 2 }
 0x9e8   : > { %p2337_p1 = pnand %p3227_p10, %p3226_p8 }
 0x9ea   : > { %p2338_p3 = pneg %p2337_p1 }
 0x9ec   : > { %2537 = dma.done.wait (%p2338_p3), %s1985_s28, 128  }
 0x9ed   : > { %2539 = vsyncadd (%p2338_p3), %s1985_s28, 4294967168  ;;  %s3228_s21 = sld [smem:[#allocation16_spill]]  ;;  %s3231_s0 = smov %s2546_s30 }
 0x9ee   : > { %s3229_s19 = sld [smem:[#allocation14_spill]] }
 0x9ef   : > { %s3230_s20 = sld [smem:[#allocation17_spill]] }
 0x9f3   : > { %p35_p9 = scmp.ge.s32.totalorder %s3228_s21, 4  }
 0x9f4   : > { %s3232_s30 = smov %s3229_s19 }
 0x9f5   :  { %37 = sbr.rel (!%p35_p9) target bundleno = 21 (0x15), region = 165 }
 0x9fa   :  { %1990 = vsyncpa [#allocation4], 1 }
 0x9fb   :  { %1992 = vsyncpa [#allocation4 + $0x1], 1 }
 0x9fc   :  { %1993 = vsyncpa [#allocation7], 1 }
 0x9fd   :  { %1995 = vsyncpa [#allocation7 + $0x1], 1 }
 0x9fe   :  { %1996 = vsyncpa [#allocation5], 1 }
 0x9ff   :  { %1998 = vsyncpa [#allocation5 + $0x1], 1 }

</bundles_post_ra>
